<compile_context>
chip_gen: v7x
topology: tpu7x:2x2x1
jax: 0.10.0
libtpu: 0.0.40
codegen_flags: <defaults>
</compile_context>

<pallas_src>
import functools
import math

import jax
import jax.numpy as jnp
from jax.experimental import pallas as pl

# ----------------------------- config -------------------------------------
B, S, H = 2, 8, 32          # batch, sequence, hidden
NH = 4                      # attention heads
DH = H // NH                # head dim
INTER = 64                  # FFN intermediate size
LAYERS = 2                  # encoder layers
VOCAB = 50                  # word-embedding vocab
MAX_POS = 64                # position-embedding table size
LN_EPS = 1e-5
NEG_BIG = -1e9


# ----------------------------- fused Pallas kernel -------------------------

def _fused_forward_kernel(
    emb_ref, pos_ref, type_ref, nodes_ref, token_ref, attn_ref,
    emb_ln_g_ref, emb_ln_b_ref,
    wqkv_ref, bqkv_ref, wo_ref, bo_ref, ln1_g_ref, ln1_b_ref,
    wi_ref, bi_ref, wf_ref, bf_ref, ln2_g_ref, ln2_b_ref,
    pool_w_ref, pool_b_ref,
    out_ref, *, use_graph_avg):
    """Whole Model.forward (post embedding-gather) in one VMEM-resident kernel."""

    def layer_norm(y, g, b):
        mu = jnp.mean(y, axis=-1, keepdims=True)
        var = jnp.mean(jnp.square(y - mu), axis=-1, keepdims=True)
        return (y - mu) * jax.lax.rsqrt(var + LN_EPS) * g + b

    emb = emb_ref[...]                          # (B, S, H)
    attn_f = attn_ref[...]                      # (B, S, S) 0/1 float

    # graph-guided embedding averaging (code branch only; compile-time flag).
    if use_graph_avg:
        nodes = nodes_ref[...]                  # (B, S, 1)
        token = token_ref[...]                  # (B, 1, S)
        m = nodes * token * attn_f              # bool-& as 0/1 float product
        m = m / (jnp.sum(m, axis=-1, keepdims=True) + 1e-10)
        avg = jnp.einsum("bqk,bkh->bqh", m, emb,
                         preferred_element_type=jnp.float32)
        emb = emb * (1.0 - nodes) + avg * nodes

    # embeddings: word(+avg) + position + token-type, then LayerNorm.
    x = emb + pos_ref[...] + type_ref[...]
    x2 = x.reshape(B * S, H)
    x2 = layer_norm(x2, emb_ln_g_ref[...], emb_ln_b_ref[...])

    # additive attention-mask bias, computed once per forward.
    bias = (1.0 - attn_f) * NEG_BIG             # (B, S, S)

    for l in range(LAYERS):                     # static unroll; weights stay in VMEM
        # merged QKV projection: single (B*S, H) @ (H, 3H) matmul.
        qkv = jnp.dot(x2, wqkv_ref[l],
                      preferred_element_type=jnp.float32) + bqkv_ref[l]
        wo_l = wo_ref[l]                        # (H, H)

        # per-head attention; heads are static lane slices of qkv — no host
        # transposes.  1/sqrt(DH) is already folded into the Q weights.
        attn_out = bo_ref[l]                    # (1, H) — broadcasts on first add
        for h in range(NH):
            q = qkv[:, h * DH:(h + 1) * DH].reshape(B, S, DH)
            k = qkv[:, H + h * DH:H + (h + 1) * DH].reshape(B, S, DH)
            v = qkv[:, 2 * H + h * DH:2 * H + (h + 1) * DH].reshape(B, S, DH)
            s = jnp.einsum("bqd,bkd->bqk", q, k,
                           preferred_element_type=jnp.float32) + bias
            s = s - jnp.max(s, axis=-1, keepdims=True)
            p = jnp.exp(s)
            p = p / jnp.sum(p, axis=-1, keepdims=True)
            ctx = jnp.einsum("bqk,bkd->bqd", p, v,
                             preferred_element_type=jnp.float32)
            # fold the output projection per head (skips the head concat):
            attn_out = attn_out + jnp.dot(ctx.reshape(B * S, DH),
                                          wo_l[h * DH:(h + 1) * DH, :],
                                          preferred_element_type=jnp.float32)

        x2 = layer_norm(attn_out + x2, ln1_g_ref[l], ln1_b_ref[l])

        inter = jnp.dot(x2, wi_ref[l],
                        preferred_element_type=jnp.float32) + bi_ref[l]
        # TODO(synk): reference RoBERTa uses exact erf GELU; tanh approx used here.
        inter = jax.nn.gelu(inter, approximate=True)
        ffn = jnp.dot(inter, wf_ref[l],
                      preferred_element_type=jnp.float32) + bf_ref[l]
        x2 = layer_norm(ffn + x2, ln2_g_ref[l], ln2_b_ref[l])

    # pooler: tanh(dense(CLS))  == encoder(...)[1]
    cls = x2.reshape(B, S, H)[:, 0, :]          # (B, H)
    pooled = jnp.tanh(
        jnp.dot(cls, pool_w_ref[...], preferred_element_type=jnp.float32)
        + pool_b_ref[...])
    out_ref[...] = pooled


def _run_fused(params, emb, pos, nodes_col, token_row, attn_f, *, use_graph_avg):
    kernel = functools.partial(_fused_forward_kernel, use_graph_avg=use_graph_avg)
    # Grid-less call: every operand is a whole-array VMEM-resident block.
    return pl.pallas_call(
        kernel,
        out_shape=jax.ShapeDtypeStruct((B, H), jnp.float32),
    )(emb, pos, params["type_emb"], nodes_col, token_row, attn_f,
      params["emb_ln_g"], params["emb_ln_b"],
      params["wqkv"], params["bqkv"], params["wo"], params["bo"],
      params["ln1_g"], params["ln1_b"],
      params["wi"], params["bi"], params["wf"], params["bf"],
      params["ln2_g"], params["ln2_b"],
      params["pool_w"], params["pool_b"])


# ----------------------------- JAX glue (gathers / masks) ------------------

def _code_glue(params, code_inputs, attn_mask, position_idx):
    emb = params["word_emb"][code_inputs]                     # gather (XLA glue)
    pos = params["pos_emb"][position_idx]                     # gather (XLA glue)
    nodes_col = (position_idx == 0).astype(jnp.float32)[:, :, None]   # (B,S,1)
    token_row = (position_idx >= 2).astype(jnp.float32)[:, None, :]   # (B,1,S)
    attn_f = attn_mask.astype(jnp.float32)                    # (B,S,S)
    return emb, pos, nodes_col, token_row, attn_f


def model_forward_code(params, code_inputs, attn_mask, position_idx):
    """code branch of Model.forward (code_inputs is not None)."""
    glue = _code_glue(params, code_inputs, attn_mask, position_idx)
    return _run_fused(params, *glue, use_graph_avg=True)


def _nl_glue(params, nl_inputs):
    valid = (nl_inputs != 1)
    emb = params["word_emb"][nl_inputs]
    attn_f = jnp.broadcast_to(valid[:, None, :].astype(jnp.float32), (B, S, S))
    # RoBERTa create_position_ids_from_input_ids (padding_idx = 1)
    pos_ids = jnp.cumsum(valid.astype(jnp.int32), axis=1) * valid.astype(jnp.int32) + 1
    pos = params["pos_emb"][pos_ids]
    nodes_col = jnp.zeros((B, S, 1), jnp.float32)   # unused when use_graph_avg=False
    token_row = jnp.zeros((B, 1, S), jnp.float32)
    return emb, pos, nodes_col, token_row, attn_f


def model_forward_nl(params, nl_inputs):
    """nl branch of Model.forward (code_inputs is None)."""
    return _run_fused(params, *_nl_glue(params, nl_inputs), use_graph_avg=False)


# ----------------------------- parameters ----------------------------------

def init_params(key):
    def nrm(k, shape):
        return (0.02 * jax.random.normal(k, shape)).astype(jnp.float32)

    ks = jax.random.split(key, 10)
    scale = 1.0 / math.sqrt(DH)
    wq = nrm(ks[3], (LAYERS, H, H)) * scale      # attention scale folded into Q proj
    wk = nrm(ks[4], (LAYERS, H, H))
    wv = nrm(ks[5], (LAYERS, H, H))
    return dict(
        word_emb=nrm(ks[0], (VOCAB, H)),
        pos_emb=nrm(ks[1], (MAX_POS, H)),
        type_emb=nrm(ks[2], (1, 1, H)),
        emb_ln_g=jnp.ones((1, H), jnp.float32),
        emb_ln_b=jnp.zeros((1, H), jnp.float32),
        wqkv=jnp.concatenate([wq, wk, wv], axis=-1),        # (L, H, 3H)
        bqkv=jnp.zeros((LAYERS, 1, 3 * H), jnp.float32),    # (q-part scaled; zeros here)
        wo=nrm(ks[6], (LAYERS, H, H)),
        bo=jnp.zeros((LAYERS, 1, H), jnp.float32),
        ln1_g=jnp.ones((LAYERS, 1, H), jnp.float32),
        ln1_b=jnp.zeros((LAYERS, 1, H), jnp.float32),
        wi=nrm(ks[7], (LAYERS, H, INTER)),
        bi=jnp.zeros((LAYERS, 1, INTER), jnp.float32),
        wf=nrm(ks[8], (LAYERS, INTER, H)),
        bf=jnp.zeros((LAYERS, 1, H), jnp.float32),
        ln2_g=jnp.ones((LAYERS, 1, H), jnp.float32),
        ln2_b=jnp.zeros((LAYERS, 1, H), jnp.float32),
        pool_w=nrm(ks[9], (H, H)),
        pool_b=jnp.zeros((1, H), jnp.float32),
    )


# ----------------------------- pure-JAX reference ---------------------------

def reference_forward(params, emb, pos, nodes_col, token_row, attn_f, *, use_graph_avg):
    hp = jax.lax.Precision.HIGHEST
    if use_graph_avg:
        m = nodes_col * token_row * attn_f
        m = m / (jnp.sum(m, axis=-1, keepdims=True) + 1e-10)
        avg = jnp.einsum("bqk,bkh->bqh", m, emb, precision=hp)
        emb = emb * (1.0 - nodes_col) + avg * nodes_col

    def ln(y, g, b):
        mu = jnp.mean(y, axis=-1, keepdims=True)
        var = jnp.mean(jnp.square(y - mu), axis=-1, keepdims=True)
        return (y - mu) * jax.lax.rsqrt(var + LN_EPS) * g + b

    x2 = (emb + pos + params["type_emb"]).reshape(B * S, H)
    x2 = ln(x2, params["emb_ln_g"], params["emb_ln_b"])
    bias = (1.0 - attn_f) * NEG_BIG
    for l in range(LAYERS):
        qkv = jnp.dot(x2, params["wqkv"][l], precision=hp) + params["bqkv"][l]
        q = qkv[:, :H].reshape(B, S, NH, DH).transpose(0, 2, 1, 3)
        k = qkv[:, H:2 * H].reshape(B, S, NH, DH).transpose(0, 2, 1, 3)
        v = qkv[:, 2 * H:].reshape(B, S, NH, DH).transpose(0, 2, 1, 3)
        s = jnp.einsum("bhqd,bhkd->bhqk", q, k, precision=hp) + bias[:, None]
        p = jax.nn.softmax(s, axis=-1)
        ctx = jnp.einsum("bhqk,bhkd->bhqd", p, v, precision=hp)
        ctx = ctx.transpose(0, 2, 1, 3).reshape(B * S, H)
        attn_out = jnp.dot(ctx, params["wo"][l], precision=hp) + params["bo"][l]
        x2 = ln(attn_out + x2, params["ln1_g"][l], params["ln1_b"][l])
        inter = jax.nn.gelu(jnp.dot(x2, params["wi"][l], precision=hp) + params["bi"][l],
                            approximate=True)
        ffn = jnp.dot(inter, params["wf"][l], precision=hp) + params["bf"][l]
        x2 = ln(ffn + x2, params["ln2_g"][l], params["ln2_b"][l])
    cls = x2.reshape(B, S, H)[:, 0, :]
    return jnp.tanh(jnp.dot(cls, params["pool_w"], precision=hp) + params["pool_b"])


# ----------------------------- main ----------------------------------------

if __name__ == "__main__":
    root = jax.random.PRNGKey(0)
    k_params, k_code, k_nl = jax.random.split(root, 3)
    params = init_params(k_params)

    # GraphCodeBERT conventions: token positions >= 2, AST nodes = 0, pad = 1.
    code_inputs = jax.random.randint(k_code, (B, S), 0, VOCAB, dtype=jnp.int32)
    position_idx = jnp.array([[2, 3, 4, 5, 6, 0, 0, 1],
                              [2, 3, 4, 5, 0, 0, 1, 1]], dtype=jnp.int32)
    valid = position_idx != 1
    attn_mask = valid[:, :, None] & valid[:, None, :]        # (B,S,S) bool

    pooled_code = jax.block_until_ready(
        jax.jit(model_forward_code)(params, code_inputs, attn_mask, position_idx))

    nl_inputs = jax.random.randint(k_nl, (B, S), 2, VOCAB, dtype=jnp.int32)
    nl_inputs = nl_inputs.at[:, -2:].set(1)                  # trailing padding
    pooled_nl = jax.block_until_ready(jax.jit(model_forward_nl)(params, nl_inputs))

    # correctness against a pure-JAX reference of the same math.
    ref_code = reference_forward(
        params, *_code_glue(params, code_inputs, attn_mask, position_idx),
        use_graph_avg=True)
    ref_nl = reference_forward(params, *_nl_glue(params, nl_inputs),
                               use_graph_avg=False)

    assert pooled_code.shape == (B, H) and pooled_nl.shape == (B, H)
    assert bool(jnp.all(jnp.isfinite(pooled_code)))
    assert bool(jnp.all(jnp.isfinite(pooled_nl)))
    assert bool(jnp.allclose(pooled_code, ref_code, atol=1e-3, rtol=1e-3))
    assert bool(jnp.allclose(pooled_nl, ref_nl, atol=1e-3, rtol=1e-3))
    print("KERNEL_OK")
</pallas_src>

<mosaic_0001>
module attributes {stable_mosaic.version = 11 : i64} {
  func.func @_fused_forward_kernel(%arg0: memref<2x8x32xf32, #tpu.memory_space<vmem>>, %arg1: memref<2x8x32xf32, #tpu.memory_space<vmem>>, %arg2: memref<1x1x32xf32, #tpu.memory_space<vmem>>, %arg3: memref<2x8x1xf32, #tpu.memory_space<vmem>>, %arg4: memref<2x1x8xf32, #tpu.memory_space<vmem>>, %arg5: memref<2x8x8xf32, #tpu.memory_space<vmem>>, %arg6: memref<1x32xf32, #tpu.memory_space<vmem>>, %arg7: memref<1x32xf32, #tpu.memory_space<vmem>>, %arg8: memref<2x32x96xf32, #tpu.memory_space<vmem>>, %arg9: memref<2x1x96xf32, #tpu.memory_space<vmem>>, %arg10: memref<2x32x32xf32, #tpu.memory_space<vmem>>, %arg11: memref<2x1x32xf32, #tpu.memory_space<vmem>>, %arg12: memref<2x1x32xf32, #tpu.memory_space<vmem>>, %arg13: memref<2x1x32xf32, #tpu.memory_space<vmem>>, %arg14: memref<2x32x64xf32, #tpu.memory_space<vmem>>, %arg15: memref<2x1x64xf32, #tpu.memory_space<vmem>>, %arg16: memref<2x64x32xf32, #tpu.memory_space<vmem>>, %arg17: memref<2x1x32xf32, #tpu.memory_space<vmem>>, %arg18: memref<2x1x32xf32, #tpu.memory_space<vmem>>, %arg19: memref<2x1x32xf32, #tpu.memory_space<vmem>>, %arg20: memref<32x32xf32, #tpu.memory_space<vmem>>, %arg21: memref<1x32xf32, #tpu.memory_space<vmem>>, %arg22: memref<2x32xf32, #tpu.memory_space<vmem>>) attributes {dimension_semantics = [], scalar_prefetch = 0 : i64, scratch_operands = 0 : i64, tpu.core_type = #tpu.core_type<tc>} {
    %c0 = arith.constant 0 : index
    %c0_0 = arith.constant 0 : index
    %c0_1 = arith.constant 0 : index
    %0 = vector.load %arg0[%c0, %c0_0, %c0_1] : memref<2x8x32xf32, #tpu.memory_space<vmem>>, vector<2x8x32xf32>
    %c0_2 = arith.constant 0 : index
    %c0_3 = arith.constant 0 : index
    %c0_4 = arith.constant 0 : index
    %1 = vector.load %arg5[%c0_2, %c0_3, %c0_4] : memref<2x8x8xf32, #tpu.memory_space<vmem>>, vector<2x8x8xf32>
    %c0_5 = arith.constant 0 : index
    %c0_6 = arith.constant 0 : index
    %c0_7 = arith.constant 0 : index
    %2 = vector.load %arg3[%c0_5, %c0_6, %c0_7] : memref<2x8x1xf32, #tpu.memory_space<vmem>>, vector<2x8x1xf32>
    %c0_8 = arith.constant 0 : index
    %c0_9 = arith.constant 0 : index
    %c0_10 = arith.constant 0 : index
    %3 = vector.load %arg4[%c0_8, %c0_9, %c0_10] : memref<2x1x8xf32, #tpu.memory_space<vmem>>, vector<2x1x8xf32>
    %4 = vector.broadcast %2 : vector<2x8x1xf32> to vector<2x8x8xf32>
    %5 = vector.broadcast %3 : vector<2x1x8xf32> to vector<2x8x8xf32>
    %6 = arith.mulf %4, %5 : vector<2x8x8xf32>
    %7 = arith.mulf %6, %1 : vector<2x8x8xf32>
    %cst = arith.constant dense<0.000000e+00> : vector<2x8xf32>
    %8 = vector.multi_reduction <add>, %7, %cst [2] : vector<2x8x8xf32> to vector<2x8xf32>
    %9 = vector.shape_cast %8 : vector<2x8xf32> to vector<2x8x1xf32>
    %cst_11 = arith.constant 1.000000e-10 : f32
    %10 = vector.broadcast %cst_11 : f32 to vector<2x8x1xf32>
    %11 = arith.addf %9, %10 : vector<2x8x1xf32>
    %12 = vector.broadcast %11 : vector<2x8x1xf32> to vector<2x8x8xf32>
    %13 = arith.divf %7, %12 : vector<2x8x8xf32>
    "tpu.trace_start"() <{level = 10 : i32, message = "bqk,bkh->bqh"}> : () -> ()
    %cst_12 = arith.constant dense<0.000000e+00> : vector<2x8x32xf32>
    %14 = tpu.matmul %13, %0, %cst_12 {dimension_numbers = #tpu.dot_dimension_numbers<[2], [1], [1], [2], [0, 0, 0, 1, 1, 2], [0], [0]>} : vector<2x8x8xf32>, vector<2x8x32xf32>, vector<2x8x32xf32> -> vector<2x8x32xf32>
    "tpu.trace_stop"() : () -> ()
    %cst_13 = arith.constant 1.000000e+00 : f32
    %15 = vector.broadcast %cst_13 : f32 to vector<2x8x1xf32>
    %16 = arith.subf %15, %2 : vector<2x8x1xf32>
    %17 = vector.broadcast %16 : vector<2x8x1xf32> to vector<2x8x32xf32>
    %18 = arith.mulf %0, %17 : vector<2x8x32xf32>
    %19 = vector.broadcast %2 : vector<2x8x1xf32> to vector<2x8x32xf32>
    %20 = arith.mulf %14, %19 : vector<2x8x32xf32>
    %21 = arith.addf %18, %20 : vector<2x8x32xf32>
    %c0_14 = arith.constant 0 : index
    %c0_15 = arith.constant 0 : index
    %c0_16 = arith.constant 0 : index
    %22 = vector.load %arg1[%c0_14, %c0_15, %c0_16] : memref<2x8x32xf32, #tpu.memory_space<vmem>>, vector<2x8x32xf32>
    %23 = arith.addf %21, %22 : vector<2x8x32xf32>
    %c0_17 = arith.constant 0 : index
    %c0_18 = arith.constant 0 : index
    %c0_19 = arith.constant 0 : index
    %24 = vector.load %arg2[%c0_17, %c0_18, %c0_19] : memref<1x1x32xf32, #tpu.memory_space<vmem>>, vector<1x1x32xf32>
    %25 = vector.broadcast %24 : vector<1x1x32xf32> to vector<2x8x32xf32>
    %26 = arith.addf %23, %25 : vector<2x8x32xf32>
    %27 = vector.shape_cast %26 : vector<2x8x32xf32> to vector<16x32xf32>
    %c0_20 = arith.constant 0 : index
    %c0_21 = arith.constant 0 : index
    %28 = vector.load %arg6[%c0_20, %c0_21] : memref<1x32xf32, #tpu.memory_space<vmem>>, vector<1x32xf32>
    %c0_22 = arith.constant 0 : index
    %c0_23 = arith.constant 0 : index
    %29 = vector.load %arg7[%c0_22, %c0_23] : memref<1x32xf32, #tpu.memory_space<vmem>>, vector<1x32xf32>
    %cst_24 = arith.constant dense<0.000000e+00> : vector<16xf32>
    %30 = vector.multi_reduction <add>, %27, %cst_24 [1] : vector<16x32xf32> to vector<16xf32>
    %31 = vector.shape_cast %30 : vector<16xf32> to vector<16x1xf32>
    %cst_25 = arith.constant 3.200000e+01 : f32
    %32 = vector.broadcast %cst_25 : f32 to vector<16x1xf32>
    %33 = arith.divf %31, %32 : vector<16x1xf32>
    %34 = vector.broadcast %33 : vector<16x1xf32> to vector<16x32xf32>
    %35 = arith.subf %27, %34 : vector<16x32xf32>
    %36 = arith.mulf %35, %35 : vector<16x32xf32>
    %cst_26 = arith.constant dense<0.000000e+00> : vector<16xf32>
    %37 = vector.multi_reduction <add>, %36, %cst_26 [1] : vector<16x32xf32> to vector<16xf32>
    %38 = vector.shape_cast %37 : vector<16xf32> to vector<16x1xf32>
    %cst_27 = arith.constant 3.200000e+01 : f32
    %39 = vector.broadcast %cst_27 : f32 to vector<16x1xf32>
    %40 = arith.divf %38, %39 : vector<16x1xf32>
    %41 = vector.broadcast %33 : vector<16x1xf32> to vector<16x32xf32>
    %42 = arith.subf %27, %41 : vector<16x32xf32>
    %cst_28 = arith.constant 9.99999974E-6 : f32
    %43 = vector.broadcast %cst_28 : f32 to vector<16x1xf32>
    %44 = arith.addf %40, %43 : vector<16x1xf32>
    %45 = math.rsqrt %44 : vector<16x1xf32>
    %46 = vector.broadcast %45 : vector<16x1xf32> to vector<16x32xf32>
    %47 = arith.mulf %42, %46 : vector<16x32xf32>
    %48 = vector.broadcast %28 : vector<1x32xf32> to vector<16x32xf32>
    %49 = arith.mulf %47, %48 : vector<16x32xf32>
    %50 = vector.broadcast %29 : vector<1x32xf32> to vector<16x32xf32>
    %51 = arith.addf %49, %50 : vector<16x32xf32>
    %cst_29 = arith.constant 1.000000e+00 : f32
    %52 = vector.broadcast %cst_29 : f32 to vector<2x8x8xf32>
    %53 = arith.subf %52, %1 : vector<2x8x8xf32>
    %cst_30 = arith.constant -1.000000e+09 : f32
    %54 = vector.broadcast %cst_30 : f32 to vector<2x8x8xf32>
    %55 = arith.mulf %53, %54 : vector<2x8x8xf32>
    %c0_31 = arith.constant 0 : index
    %c0_32 = arith.constant 0 : index
    %c0_33 = arith.constant 0 : index
    %56 = vector.load %arg8[%c0_31, %c0_32, %c0_33] : memref<2x32x96xf32, #tpu.memory_space<vmem>>, vector<1x32x96xf32>
    %57 = vector.shape_cast %56 : vector<1x32x96xf32> to vector<32x96xf32>
    %cst_34 = arith.constant dense<0.000000e+00> : vector<16x96xf32>
    %58 = tpu.matmul %51, %57, %cst_34 {dimension_numbers = #tpu.dot_dimension_numbers<[1], [0], [0], [1], [0, 0, 1, 1], [], []>} : vector<16x32xf32>, vector<32x96xf32>, vector<16x96xf32> -> vector<16x96xf32>
    %c0_35 = arith.constant 0 : index
    %c0_36 = arith.constant 0 : index
    %c0_37 = arith.constant 0 : index
    %59 = vector.load %arg9[%c0_35, %c0_36, %c0_37] : memref<2x1x96xf32, #tpu.memory_space<vmem>>, vector<1x1x96xf32>
    %60 = vector.shape_cast %59 : vector<1x1x96xf32> to vector<1x96xf32>
    %61 = vector.broadcast %60 : vector<1x96xf32> to vector<16x96xf32>
    %62 = arith.addf %58, %61 : vector<16x96xf32>
    %c0_38 = arith.constant 0 : index
    %c0_39 = arith.constant 0 : index
    %c0_40 = arith.constant 0 : index
    %63 = vector.load %arg10[%c0_38, %c0_39, %c0_40] : memref<2x32x32xf32, #tpu.memory_space<vmem>>, vector<1x32x32xf32>
    %64 = vector.shape_cast %63 : vector<1x32x32xf32> to vector<32x32xf32>
    %c0_41 = arith.constant 0 : index
    %c0_42 = arith.constant 0 : index
    %c0_43 = arith.constant 0 : index
    %65 = vector.load %arg11[%c0_41, %c0_42, %c0_43] : memref<2x1x32xf32, #tpu.memory_space<vmem>>, vector<1x1x32xf32>
    %66 = vector.shape_cast %65 : vector<1x1x32xf32> to vector<1x32xf32>
    %67 = vector.extract_strided_slice %62 {offsets = [0, 0], sizes = [16, 8], strides = [1, 1]} : vector<16x96xf32> to vector<16x8xf32>
    %68 = vector.shape_cast %67 : vector<16x8xf32> to vector<2x8x8xf32>
    %69 = vector.extract_strided_slice %62 {offsets = [0, 32], sizes = [16, 8], strides = [1, 1]} : vector<16x96xf32> to vector<16x8xf32>
    %70 = vector.shape_cast %69 : vector<16x8xf32> to vector<2x8x8xf32>
    %71 = vector.extract_strided_slice %62 {offsets = [0, 64], sizes = [16, 8], strides = [1, 1]} : vector<16x96xf32> to vector<16x8xf32>
    %72 = vector.shape_cast %71 : vector<16x8xf32> to vector<2x8x8xf32>
    "tpu.trace_start"() <{level = 10 : i32, message = "bqd,bkd->bqk"}> : () -> ()
    %cst_44 = arith.constant dense<0.000000e+00> : vector<2x8x8xf32>
    %73 = tpu.matmul %68, %70, %cst_44 {dimension_numbers = #tpu.dot_dimension_numbers<[2], [2], [1], [1], [0, 0, 0, 1, 1, 1], [0], [0]>} : vector<2x8x8xf32>, vector<2x8x8xf32>, vector<2x8x8xf32> -> vector<2x8x8xf32>
    "tpu.trace_stop"() : () -> ()
    %74 = arith.addf %73, %55 : vector<2x8x8xf32>
    %cst_45 = arith.constant dense<0xFF800000> : vector<2x8xf32>
    %75 = vector.multi_reduction <maximumf>, %74, %cst_45 [2] : vector<2x8x8xf32> to vector<2x8xf32>
    %76 = vector.shape_cast %75 : vector<2x8xf32> to vector<2x8x1xf32>
    %77 = vector.broadcast %76 : vector<2x8x1xf32> to vector<2x8x8xf32>
    %78 = arith.subf %74, %77 : vector<2x8x8xf32>
    %79 = math.exp %78 : vector<2x8x8xf32>
    %cst_46 = arith.constant dense<0.000000e+00> : vector<2x8xf32>
    %80 = vector.multi_reduction <add>, %79, %cst_46 [2] : vector<2x8x8xf32> to vector<2x8xf32>
    %81 = vector.shape_cast %80 : vector<2x8xf32> to vector<2x8x1xf32>
    %82 = vector.broadcast %81 : vector<2x8x1xf32> to vector<2x8x8xf32>
    %83 = arith.divf %79, %82 : vector<2x8x8xf32>
    "tpu.trace_start"() <{level = 10 : i32, message = "bqk,bkd->bqd"}> : () -> ()
    %cst_47 = arith.constant dense<0.000000e+00> : vector<2x8x8xf32>
    %84 = tpu.matmul %83, %72, %cst_47 {dimension_numbers = #tpu.dot_dimension_numbers<[2], [1], [1], [2], [0, 0, 0, 1, 1, 2], [0], [0]>} : vector<2x8x8xf32>, vector<2x8x8xf32>, vector<2x8x8xf32> -> vector<2x8x8xf32>
    "tpu.trace_stop"() : () -> ()
    %85 = vector.shape_cast %84 : vector<2x8x8xf32> to vector<16x8xf32>
    %86 = vector.extract_strided_slice %64 {offsets = [0, 0], sizes = [8, 32], strides = [1, 1]} : vector<32x32xf32> to vector<8x32xf32>
    %cst_48 = arith.constant dense<0.000000e+00> : vector<16x32xf32>
    %87 = tpu.matmul %85, %86, %cst_48 {dimension_numbers = #tpu.dot_dimension_numbers<[1], [0], [0], [1], [0, 0, 1, 1], [], []>} : vector<16x8xf32>, vector<8x32xf32>, vector<16x32xf32> -> vector<16x32xf32>
    %88 = vector.broadcast %66 : vector<1x32xf32> to vector<16x32xf32>
    %89 = arith.addf %88, %87 : vector<16x32xf32>
    %90 = vector.extract_strided_slice %62 {offsets = [0, 8], sizes = [16, 8], strides = [1, 1]} : vector<16x96xf32> to vector<16x8xf32>
    %91 = vector.shape_cast %90 : vector<16x8xf32> to vector<2x8x8xf32>
    %92 = vector.extract_strided_slice %62 {offsets = [0, 40], sizes = [16, 8], strides = [1, 1]} : vector<16x96xf32> to vector<16x8xf32>
    %93 = vector.shape_cast %92 : vector<16x8xf32> to vector<2x8x8xf32>
    %94 = vector.extract_strided_slice %62 {offsets = [0, 72], sizes = [16, 8], strides = [1, 1]} : vector<16x96xf32> to vector<16x8xf32>
    %95 = vector.shape_cast %94 : vector<16x8xf32> to vector<2x8x8xf32>
    "tpu.trace_start"() <{level = 10 : i32, message = "bqd,bkd->bqk"}> : () -> ()
    %cst_49 = arith.constant dense<0.000000e+00> : vector<2x8x8xf32>
    %96 = tpu.matmul %91, %93, %cst_49 {dimension_numbers = #tpu.dot_dimension_numbers<[2], [2], [1], [1], [0, 0, 0, 1, 1, 1], [0], [0]>} : vector<2x8x8xf32>, vector<2x8x8xf32>, vector<2x8x8xf32> -> vector<2x8x8xf32>
    "tpu.trace_stop"() : () -> ()
    %97 = arith.addf %96, %55 : vector<2x8x8xf32>
    %cst_50 = arith.constant dense<0xFF800000> : vector<2x8xf32>
    %98 = vector.multi_reduction <maximumf>, %97, %cst_50 [2] : vector<2x8x8xf32> to vector<2x8xf32>
    %99 = vector.shape_cast %98 : vector<2x8xf32> to vector<2x8x1xf32>
    %100 = vector.broadcast %99 : vector<2x8x1xf32> to vector<2x8x8xf32>
    %101 = arith.subf %97, %100 : vector<2x8x8xf32>
    %102 = math.exp %101 : vector<2x8x8xf32>
    %cst_51 = arith.constant dense<0.000000e+00> : vector<2x8xf32>
    %103 = vector.multi_reduction <add>, %102, %cst_51 [2] : vector<2x8x8xf32> to vector<2x8xf32>
    %104 = vector.shape_cast %103 : vector<2x8xf32> to vector<2x8x1xf32>
    %105 = vector.broadcast %104 : vector<2x8x1xf32> to vector<2x8x8xf32>
    %106 = arith.divf %102, %105 : vector<2x8x8xf32>
    "tpu.trace_start"() <{level = 10 : i32, message = "bqk,bkd->bqd"}> : () -> ()
    %cst_52 = arith.constant dense<0.000000e+00> : vector<2x8x8xf32>
    %107 = tpu.matmul %106, %95, %cst_52 {dimension_numbers = #tpu.dot_dimension_numbers<[2], [1], [1], [2], [0, 0, 0, 1, 1, 2], [0], [0]>} : vector<2x8x8xf32>, vector<2x8x8xf32>, vector<2x8x8xf32> -> vector<2x8x8xf32>
    "tpu.trace_stop"() : () -> ()
    %108 = vector.shape_cast %107 : vector<2x8x8xf32> to vector<16x8xf32>
    %109 = vector.extract_strided_slice %64 {offsets = [8, 0], sizes = [8, 32], strides = [1, 1]} : vector<32x32xf32> to vector<8x32xf32>
    %cst_53 = arith.constant dense<0.000000e+00> : vector<16x32xf32>
    %110 = tpu.matmul %108, %109, %cst_53 {dimension_numbers = #tpu.dot_dimension_numbers<[1], [0], [0], [1], [0, 0, 1, 1], [], []>} : vector<16x8xf32>, vector<8x32xf32>, vector<16x32xf32> -> vector<16x32xf32>
    %111 = arith.addf %89, %110 : vector<16x32xf32>
    %112 = vector.extract_strided_slice %62 {offsets = [0, 16], sizes = [16, 8], strides = [1, 1]} : vector<16x96xf32> to vector<16x8xf32>
    %113 = vector.shape_cast %112 : vector<16x8xf32> to vector<2x8x8xf32>
    %114 = vector.extract_strided_slice %62 {offsets = [0, 48], sizes = [16, 8], strides = [1, 1]} : vector<16x96xf32> to vector<16x8xf32>
    %115 = vector.shape_cast %114 : vector<16x8xf32> to vector<2x8x8xf32>
    %116 = vector.extract_strided_slice %62 {offsets = [0, 80], sizes = [16, 8], strides = [1, 1]} : vector<16x96xf32> to vector<16x8xf32>
    %117 = vector.shape_cast %116 : vector<16x8xf32> to vector<2x8x8xf32>
    "tpu.trace_start"() <{level = 10 : i32, message = "bqd,bkd->bqk"}> : () -> ()
    %cst_54 = arith.constant dense<0.000000e+00> : vector<2x8x8xf32>
    %118 = tpu.matmul %113, %115, %cst_54 {dimension_numbers = #tpu.dot_dimension_numbers<[2], [2], [1], [1], [0, 0, 0, 1, 1, 1], [0], [0]>} : vector<2x8x8xf32>, vector<2x8x8xf32>, vector<2x8x8xf32> -> vector<2x8x8xf32>
    "tpu.trace_stop"() : () -> ()
    %119 = arith.addf %118, %55 : vector<2x8x8xf32>
    %cst_55 = arith.constant dense<0xFF800000> : vector<2x8xf32>
    %120 = vector.multi_reduction <maximumf>, %119, %cst_55 [2] : vector<2x8x8xf32> to vector<2x8xf32>
    %121 = vector.shape_cast %120 : vector<2x8xf32> to vector<2x8x1xf32>
    %122 = vector.broadcast %121 : vector<2x8x1xf32> to vector<2x8x8xf32>
    %123 = arith.subf %119, %122 : vector<2x8x8xf32>
    %124 = math.exp %123 : vector<2x8x8xf32>
    %cst_56 = arith.constant dense<0.000000e+00> : vector<2x8xf32>
    %125 = vector.multi_reduction <add>, %124, %cst_56 [2] : vector<2x8x8xf32> to vector<2x8xf32>
    %126 = vector.shape_cast %125 : vector<2x8xf32> to vector<2x8x1xf32>
    %127 = vector.broadcast %126 : vector<2x8x1xf32> to vector<2x8x8xf32>
    %128 = arith.divf %124, %127 : vector<2x8x8xf32>
    "tpu.trace_start"() <{level = 10 : i32, message = "bqk,bkd->bqd"}> : () -> ()
    %cst_57 = arith.constant dense<0.000000e+00> : vector<2x8x8xf32>
    %129 = tpu.matmul %128, %117, %cst_57 {dimension_numbers = #tpu.dot_dimension_numbers<[2], [1], [1], [2], [0, 0, 0, 1, 1, 2], [0], [0]>} : vector<2x8x8xf32>, vector<2x8x8xf32>, vector<2x8x8xf32> -> vector<2x8x8xf32>
    "tpu.trace_stop"() : () -> ()
    %130 = vector.shape_cast %129 : vector<2x8x8xf32> to vector<16x8xf32>
    %131 = vector.extract_strided_slice %64 {offsets = [16, 0], sizes = [8, 32], strides = [1, 1]} : vector<32x32xf32> to vector<8x32xf32>
    %cst_58 = arith.constant dense<0.000000e+00> : vector<16x32xf32>
    %132 = tpu.matmul %130, %131, %cst_58 {dimension_numbers = #tpu.dot_dimension_numbers<[1], [0], [0], [1], [0, 0, 1, 1], [], []>} : vector<16x8xf32>, vector<8x32xf32>, vector<16x32xf32> -> vector<16x32xf32>
    %133 = arith.addf %111, %132 : vector<16x32xf32>
    %134 = vector.extract_strided_slice %62 {offsets = [0, 24], sizes = [16, 8], strides = [1, 1]} : vector<16x96xf32> to vector<16x8xf32>
    %135 = vector.shape_cast %134 : vector<16x8xf32> to vector<2x8x8xf32>
    %136 = vector.extract_strided_slice %62 {offsets = [0, 56], sizes = [16, 8], strides = [1, 1]} : vector<16x96xf32> to vector<16x8xf32>
    %137 = vector.shape_cast %136 : vector<16x8xf32> to vector<2x8x8xf32>
    %138 = vector.extract_strided_slice %62 {offsets = [0, 88], sizes = [16, 8], strides = [1, 1]} : vector<16x96xf32> to vector<16x8xf32>
    %139 = vector.shape_cast %138 : vector<16x8xf32> to vector<2x8x8xf32>
    "tpu.trace_start"() <{level = 10 : i32, message = "bqd,bkd->bqk"}> : () -> ()
    %cst_59 = arith.constant dense<0.000000e+00> : vector<2x8x8xf32>
    %140 = tpu.matmul %135, %137, %cst_59 {dimension_numbers = #tpu.dot_dimension_numbers<[2], [2], [1], [1], [0, 0, 0, 1, 1, 1], [0], [0]>} : vector<2x8x8xf32>, vector<2x8x8xf32>, vector<2x8x8xf32> -> vector<2x8x8xf32>
    "tpu.trace_stop"() : () -> ()
    %141 = arith.addf %140, %55 : vector<2x8x8xf32>
    %cst_60 = arith.constant dense<0xFF800000> : vector<2x8xf32>
    %142 = vector.multi_reduction <maximumf>, %141, %cst_60 [2] : vector<2x8x8xf32> to vector<2x8xf32>
    %143 = vector.shape_cast %142 : vector<2x8xf32> to vector<2x8x1xf32>
    %144 = vector.broadcast %143 : vector<2x8x1xf32> to vector<2x8x8xf32>
    %145 = arith.subf %141, %144 : vector<2x8x8xf32>
    %146 = math.exp %145 : vector<2x8x8xf32>
    %cst_61 = arith.constant dense<0.000000e+00> : vector<2x8xf32>
    %147 = vector.multi_reduction <add>, %146, %cst_61 [2] : vector<2x8x8xf32> to vector<2x8xf32>
    %148 = vector.shape_cast %147 : vector<2x8xf32> to vector<2x8x1xf32>
    %149 = vector.broadcast %148 : vector<2x8x1xf32> to vector<2x8x8xf32>
    %150 = arith.divf %146, %149 : vector<2x8x8xf32>
    "tpu.trace_start"() <{level = 10 : i32, message = "bqk,bkd->bqd"}> : () -> ()
    %cst_62 = arith.constant dense<0.000000e+00> : vector<2x8x8xf32>
    %151 = tpu.matmul %150, %139, %cst_62 {dimension_numbers = #tpu.dot_dimension_numbers<[2], [1], [1], [2], [0, 0, 0, 1, 1, 2], [0], [0]>} : vector<2x8x8xf32>, vector<2x8x8xf32>, vector<2x8x8xf32> -> vector<2x8x8xf32>
    "tpu.trace_stop"() : () -> ()
    %152 = vector.shape_cast %151 : vector<2x8x8xf32> to vector<16x8xf32>
    %153 = vector.extract_strided_slice %64 {offsets = [24, 0], sizes = [8, 32], strides = [1, 1]} : vector<32x32xf32> to vector<8x32xf32>
    %cst_63 = arith.constant dense<0.000000e+00> : vector<16x32xf32>
    %154 = tpu.matmul %152, %153, %cst_63 {dimension_numbers = #tpu.dot_dimension_numbers<[1], [0], [0], [1], [0, 0, 1, 1], [], []>} : vector<16x8xf32>, vector<8x32xf32>, vector<16x32xf32> -> vector<16x32xf32>
    %155 = arith.addf %133, %154 : vector<16x32xf32>
    %156 = arith.addf %155, %51 : vector<16x32xf32>
    %c0_64 = arith.constant 0 : index
    %c0_65 = arith.constant 0 : index
    %c0_66 = arith.constant 0 : index
    %157 = vector.load %arg12[%c0_64, %c0_65, %c0_66] : memref<2x1x32xf32, #tpu.memory_space<vmem>>, vector<1x1x32xf32>
    %158 = vector.shape_cast %157 : vector<1x1x32xf32> to vector<1x32xf32>
    %c0_67 = arith.constant 0 : index
    %c0_68 = arith.constant 0 : index
    %c0_69 = arith.constant 0 : index
    %159 = vector.load %arg13[%c0_67, %c0_68, %c0_69] : memref<2x1x32xf32, #tpu.memory_space<vmem>>, vector<1x1x32xf32>
    %160 = vector.shape_cast %159 : vector<1x1x32xf32> to vector<1x32xf32>
    %cst_70 = arith.constant dense<0.000000e+00> : vector<16xf32>
    %161 = vector.multi_reduction <add>, %156, %cst_70 [1] : vector<16x32xf32> to vector<16xf32>
    %162 = vector.shape_cast %161 : vector<16xf32> to vector<16x1xf32>
    %cst_71 = arith.constant 3.200000e+01 : f32
    %163 = vector.broadcast %cst_71 : f32 to vector<16x1xf32>
    %164 = arith.divf %162, %163 : vector<16x1xf32>
    %165 = vector.broadcast %164 : vector<16x1xf32> to vector<16x32xf32>
    %166 = arith.subf %156, %165 : vector<16x32xf32>
    %167 = arith.mulf %166, %166 : vector<16x32xf32>
    %cst_72 = arith.constant dense<0.000000e+00> : vector<16xf32>
    %168 = vector.multi_reduction <add>, %167, %cst_72 [1] : vector<16x32xf32> to vector<16xf32>
    %169 = vector.shape_cast %168 : vector<16xf32> to vector<16x1xf32>
    %cst_73 = arith.constant 3.200000e+01 : f32
    %170 = vector.broadcast %cst_73 : f32 to vector<16x1xf32>
    %171 = arith.divf %169, %170 : vector<16x1xf32>
    %172 = vector.broadcast %164 : vector<16x1xf32> to vector<16x32xf32>
    %173 = arith.subf %156, %172 : vector<16x32xf32>
    %cst_74 = arith.constant 9.99999974E-6 : f32
    %174 = vector.broadcast %cst_74 : f32 to vector<16x1xf32>
    %175 = arith.addf %171, %174 : vector<16x1xf32>
    %176 = math.rsqrt %175 : vector<16x1xf32>
    %177 = vector.broadcast %176 : vector<16x1xf32> to vector<16x32xf32>
    %178 = arith.mulf %173, %177 : vector<16x32xf32>
    %179 = vector.broadcast %158 : vector<1x32xf32> to vector<16x32xf32>
    %180 = arith.mulf %178, %179 : vector<16x32xf32>
    %181 = vector.broadcast %160 : vector<1x32xf32> to vector<16x32xf32>
    %182 = arith.addf %180, %181 : vector<16x32xf32>
    %c0_75 = arith.constant 0 : index
    %c0_76 = arith.constant 0 : index
    %c0_77 = arith.constant 0 : index
    %183 = vector.load %arg14[%c0_75, %c0_76, %c0_77] : memref<2x32x64xf32, #tpu.memory_space<vmem>>, vector<1x32x64xf32>
    %184 = vector.shape_cast %183 : vector<1x32x64xf32> to vector<32x64xf32>
    %cst_78 = arith.constant dense<0.000000e+00> : vector<16x64xf32>
    %185 = tpu.matmul %182, %184, %cst_78 {dimension_numbers = #tpu.dot_dimension_numbers<[1], [0], [0], [1], [0, 0, 1, 1], [], []>} : vector<16x32xf32>, vector<32x64xf32>, vector<16x64xf32> -> vector<16x64xf32>
    %c0_79 = arith.constant 0 : index
    %c0_80 = arith.constant 0 : index
    %c0_81 = arith.constant 0 : index
    %186 = vector.load %arg15[%c0_79, %c0_80, %c0_81] : memref<2x1x64xf32, #tpu.memory_space<vmem>>, vector<1x1x64xf32>
    %187 = vector.shape_cast %186 : vector<1x1x64xf32> to vector<1x64xf32>
    %188 = vector.broadcast %187 : vector<1x64xf32> to vector<16x64xf32>
    %189 = arith.addf %185, %188 : vector<16x64xf32>
    %190 = arith.mulf %189, %189 : vector<16x64xf32>
    %191 = arith.mulf %189, %190 : vector<16x64xf32>
    %cst_82 = arith.constant 4.471500e-02 : f32
    %192 = vector.broadcast %cst_82 : f32 to vector<16x64xf32>
    %193 = arith.mulf %192, %191 : vector<16x64xf32>
    %194 = arith.addf %189, %193 : vector<16x64xf32>
    %cst_83 = arith.constant 0.797884583 : f32
    %195 = vector.broadcast %cst_83 : f32 to vector<16x64xf32>
    %196 = arith.mulf %195, %194 : vector<16x64xf32>
    %197 = math.tanh %196 : vector<16x64xf32>
    %cst_84 = arith.constant 1.000000e+00 : f32
    %198 = vector.broadcast %cst_84 : f32 to vector<16x64xf32>
    %199 = arith.addf %198, %197 : vector<16x64xf32>
    %cst_85 = arith.constant 5.000000e-01 : f32
    %200 = vector.broadcast %cst_85 : f32 to vector<16x64xf32>
    %201 = arith.mulf %200, %199 : vector<16x64xf32>
    %202 = arith.mulf %189, %201 : vector<16x64xf32>
    %c0_86 = arith.constant 0 : index
    %c0_87 = arith.constant 0 : index
    %c0_88 = arith.constant 0 : index
    %203 = vector.load %arg16[%c0_86, %c0_87, %c0_88] : memref<2x64x32xf32, #tpu.memory_space<vmem>>, vector<1x64x32xf32>
    %204 = vector.shape_cast %203 : vector<1x64x32xf32> to vector<64x32xf32>
    %cst_89 = arith.constant dense<0.000000e+00> : vector<16x32xf32>
    %205 = tpu.matmul %202, %204, %cst_89 {dimension_numbers = #tpu.dot_dimension_numbers<[1], [0], [0], [1], [0, 0, 1, 1], [], []>} : vector<16x64xf32>, vector<64x32xf32>, vector<16x32xf32> -> vector<16x32xf32>
    %c0_90 = arith.constant 0 : index
    %c0_91 = arith.constant 0 : index
    %c0_92 = arith.constant 0 : index
    %206 = vector.load %arg17[%c0_90, %c0_91, %c0_92] : memref<2x1x32xf32, #tpu.memory_space<vmem>>, vector<1x1x32xf32>
    %207 = vector.shape_cast %206 : vector<1x1x32xf32> to vector<1x32xf32>
    %208 = vector.broadcast %207 : vector<1x32xf32> to vector<16x32xf32>
    %209 = arith.addf %205, %208 : vector<16x32xf32>
    %210 = arith.addf %209, %182 : vector<16x32xf32>
    %c0_93 = arith.constant 0 : index
    %c0_94 = arith.constant 0 : index
    %c0_95 = arith.constant 0 : index
    %211 = vector.load %arg18[%c0_93, %c0_94, %c0_95] : memref<2x1x32xf32, #tpu.memory_space<vmem>>, vector<1x1x32xf32>
    %212 = vector.shape_cast %211 : vector<1x1x32xf32> to vector<1x32xf32>
    %c0_96 = arith.constant 0 : index
    %c0_97 = arith.constant 0 : index
    %c0_98 = arith.constant 0 : index
    %213 = vector.load %arg19[%c0_96, %c0_97, %c0_98] : memref<2x1x32xf32, #tpu.memory_space<vmem>>, vector<1x1x32xf32>
    %214 = vector.shape_cast %213 : vector<1x1x32xf32> to vector<1x32xf32>
    %cst_99 = arith.constant dense<0.000000e+00> : vector<16xf32>
    %215 = vector.multi_reduction <add>, %210, %cst_99 [1] : vector<16x32xf32> to vector<16xf32>
    %216 = vector.shape_cast %215 : vector<16xf32> to vector<16x1xf32>
    %cst_100 = arith.constant 3.200000e+01 : f32
    %217 = vector.broadcast %cst_100 : f32 to vector<16x1xf32>
    %218 = arith.divf %216, %217 : vector<16x1xf32>
    %219 = vector.broadcast %218 : vector<16x1xf32> to vector<16x32xf32>
    %220 = arith.subf %210, %219 : vector<16x32xf32>
    %221 = arith.mulf %220, %220 : vector<16x32xf32>
    %cst_101 = arith.constant dense<0.000000e+00> : vector<16xf32>
    %222 = vector.multi_reduction <add>, %221, %cst_101 [1] : vector<16x32xf32> to vector<16xf32>
    %223 = vector.shape_cast %222 : vector<16xf32> to vector<16x1xf32>
    %cst_102 = arith.constant 3.200000e+01 : f32
    %224 = vector.broadcast %cst_102 : f32 to vector<16x1xf32>
    %225 = arith.divf %223, %224 : vector<16x1xf32>
    %226 = vector.broadcast %218 : vector<16x1xf32> to vector<16x32xf32>
    %227 = arith.subf %210, %226 : vector<16x32xf32>
    %cst_103 = arith.constant 9.99999974E-6 : f32
    %228 = vector.broadcast %cst_103 : f32 to vector<16x1xf32>
    %229 = arith.addf %225, %228 : vector<16x1xf32>
    %230 = math.rsqrt %229 : vector<16x1xf32>
    %231 = vector.broadcast %230 : vector<16x1xf32> to vector<16x32xf32>
    %232 = arith.mulf %227, %231 : vector<16x32xf32>
    %233 = vector.broadcast %212 : vector<1x32xf32> to vector<16x32xf32>
    %234 = arith.mulf %232, %233 : vector<16x32xf32>
    %235 = vector.broadcast %214 : vector<1x32xf32> to vector<16x32xf32>
    %236 = arith.addf %234, %235 : vector<16x32xf32>
    %c1 = arith.constant 1 : index
    %c0_104 = arith.constant 0 : index
    %c0_105 = arith.constant 0 : index
    %237 = vector.load %arg8[%c1, %c0_104, %c0_105] : memref<2x32x96xf32, #tpu.memory_space<vmem>>, vector<1x32x96xf32>
    %238 = vector.shape_cast %237 : vector<1x32x96xf32> to vector<32x96xf32>
    %cst_106 = arith.constant dense<0.000000e+00> : vector<16x96xf32>
    %239 = tpu.matmul %236, %238, %cst_106 {dimension_numbers = #tpu.dot_dimension_numbers<[1], [0], [0], [1], [0, 0, 1, 1], [], []>} : vector<16x32xf32>, vector<32x96xf32>, vector<16x96xf32> -> vector<16x96xf32>
    %c1_107 = arith.constant 1 : index
    %c0_108 = arith.constant 0 : index
    %c0_109 = arith.constant 0 : index
    %240 = vector.load %arg9[%c1_107, %c0_108, %c0_109] : memref<2x1x96xf32, #tpu.memory_space<vmem>>, vector<1x1x96xf32>
    %241 = vector.shape_cast %240 : vector<1x1x96xf32> to vector<1x96xf32>
    %242 = vector.broadcast %241 : vector<1x96xf32> to vector<16x96xf32>
    %243 = arith.addf %239, %242 : vector<16x96xf32>
    %c1_110 = arith.constant 1 : index
    %c0_111 = arith.constant 0 : index
    %c0_112 = arith.constant 0 : index
    %244 = vector.load %arg10[%c1_110, %c0_111, %c0_112] : memref<2x32x32xf32, #tpu.memory_space<vmem>>, vector<1x32x32xf32>
    %245 = vector.shape_cast %244 : vector<1x32x32xf32> to vector<32x32xf32>
    %c1_113 = arith.constant 1 : index
    %c0_114 = arith.constant 0 : index
    %c0_115 = arith.constant 0 : index
    %246 = vector.load %arg11[%c1_113, %c0_114, %c0_115] : memref<2x1x32xf32, #tpu.memory_space<vmem>>, vector<1x1x32xf32>
    %247 = vector.shape_cast %246 : vector<1x1x32xf32> to vector<1x32xf32>
    %248 = vector.extract_strided_slice %243 {offsets = [0, 0], sizes = [16, 8], strides = [1, 1]} : vector<16x96xf32> to vector<16x8xf32>
    %249 = vector.shape_cast %248 : vector<16x8xf32> to vector<2x8x8xf32>
    %250 = vector.extract_strided_slice %243 {offsets = [0, 32], sizes = [16, 8], strides = [1, 1]} : vector<16x96xf32> to vector<16x8xf32>
    %251 = vector.shape_cast %250 : vector<16x8xf32> to vector<2x8x8xf32>
    %252 = vector.extract_strided_slice %243 {offsets = [0, 64], sizes = [16, 8], strides = [1, 1]} : vector<16x96xf32> to vector<16x8xf32>
    %253 = vector.shape_cast %252 : vector<16x8xf32> to vector<2x8x8xf32>
    "tpu.trace_start"() <{level = 10 : i32, message = "bqd,bkd->bqk"}> : () -> ()
    %cst_116 = arith.constant dense<0.000000e+00> : vector<2x8x8xf32>
    %254 = tpu.matmul %249, %251, %cst_116 {dimension_numbers = #tpu.dot_dimension_numbers<[2], [2], [1], [1], [0, 0, 0, 1, 1, 1], [0], [0]>} : vector<2x8x8xf32>, vector<2x8x8xf32>, vector<2x8x8xf32> -> vector<2x8x8xf32>
    "tpu.trace_stop"() : () -> ()
    %255 = arith.addf %254, %55 : vector<2x8x8xf32>
    %cst_117 = arith.constant dense<0xFF800000> : vector<2x8xf32>
    %256 = vector.multi_reduction <maximumf>, %255, %cst_117 [2] : vector<2x8x8xf32> to vector<2x8xf32>
    %257 = vector.shape_cast %256 : vector<2x8xf32> to vector<2x8x1xf32>
    %258 = vector.broadcast %257 : vector<2x8x1xf32> to vector<2x8x8xf32>
    %259 = arith.subf %255, %258 : vector<2x8x8xf32>
    %260 = math.exp %259 : vector<2x8x8xf32>
    %cst_118 = arith.constant dense<0.000000e+00> : vector<2x8xf32>
    %261 = vector.multi_reduction <add>, %260, %cst_118 [2] : vector<2x8x8xf32> to vector<2x8xf32>
    %262 = vector.shape_cast %261 : vector<2x8xf32> to vector<2x8x1xf32>
    %263 = vector.broadcast %262 : vector<2x8x1xf32> to vector<2x8x8xf32>
    %264 = arith.divf %260, %263 : vector<2x8x8xf32>
    "tpu.trace_start"() <{level = 10 : i32, message = "bqk,bkd->bqd"}> : () -> ()
    %cst_119 = arith.constant dense<0.000000e+00> : vector<2x8x8xf32>
    %265 = tpu.matmul %264, %253, %cst_119 {dimension_numbers = #tpu.dot_dimension_numbers<[2], [1], [1], [2], [0, 0, 0, 1, 1, 2], [0], [0]>} : vector<2x8x8xf32>, vector<2x8x8xf32>, vector<2x8x8xf32> -> vector<2x8x8xf32>
    "tpu.trace_stop"() : () -> ()
    %266 = vector.shape_cast %265 : vector<2x8x8xf32> to vector<16x8xf32>
    %267 = vector.extract_strided_slice %245 {offsets = [0, 0], sizes = [8, 32], strides = [1, 1]} : vector<32x32xf32> to vector<8x32xf32>
    %cst_120 = arith.constant dense<0.000000e+00> : vector<16x32xf32>
    %268 = tpu.matmul %266, %267, %cst_120 {dimension_numbers = #tpu.dot_dimension_numbers<[1], [0], [0], [1], [0, 0, 1, 1], [], []>} : vector<16x8xf32>, vector<8x32xf32>, vector<16x32xf32> -> vector<16x32xf32>
    %269 = vector.broadcast %247 : vector<1x32xf32> to vector<16x32xf32>
    %270 = arith.addf %269, %268 : vector<16x32xf32>
    %271 = vector.extract_strided_slice %243 {offsets = [0, 8], sizes = [16, 8], strides = [1, 1]} : vector<16x96xf32> to vector<16x8xf32>
    %272 = vector.shape_cast %271 : vector<16x8xf32> to vector<2x8x8xf32>
    %273 = vector.extract_strided_slice %243 {offsets = [0, 40], sizes = [16, 8], strides = [1, 1]} : vector<16x96xf32> to vector<16x8xf32>
    %274 = vector.shape_cast %273 : vector<16x8xf32> to vector<2x8x8xf32>
    %275 = vector.extract_strided_slice %243 {offsets = [0, 72], sizes = [16, 8], strides = [1, 1]} : vector<16x96xf32> to vector<16x8xf32>
    %276 = vector.shape_cast %275 : vector<16x8xf32> to vector<2x8x8xf32>
    "tpu.trace_start"() <{level = 10 : i32, message = "bqd,bkd->bqk"}> : () -> ()
    %cst_121 = arith.constant dense<0.000000e+00> : vector<2x8x8xf32>
    %277 = tpu.matmul %272, %274, %cst_121 {dimension_numbers = #tpu.dot_dimension_numbers<[2], [2], [1], [1], [0, 0, 0, 1, 1, 1], [0], [0]>} : vector<2x8x8xf32>, vector<2x8x8xf32>, vector<2x8x8xf32> -> vector<2x8x8xf32>
    "tpu.trace_stop"() : () -> ()
    %278 = arith.addf %277, %55 : vector<2x8x8xf32>
    %cst_122 = arith.constant dense<0xFF800000> : vector<2x8xf32>
    %279 = vector.multi_reduction <maximumf>, %278, %cst_122 [2] : vector<2x8x8xf32> to vector<2x8xf32>
    %280 = vector.shape_cast %279 : vector<2x8xf32> to vector<2x8x1xf32>
    %281 = vector.broadcast %280 : vector<2x8x1xf32> to vector<2x8x8xf32>
    %282 = arith.subf %278, %281 : vector<2x8x8xf32>
    %283 = math.exp %282 : vector<2x8x8xf32>
    %cst_123 = arith.constant dense<0.000000e+00> : vector<2x8xf32>
    %284 = vector.multi_reduction <add>, %283, %cst_123 [2] : vector<2x8x8xf32> to vector<2x8xf32>
    %285 = vector.shape_cast %284 : vector<2x8xf32> to vector<2x8x1xf32>
    %286 = vector.broadcast %285 : vector<2x8x1xf32> to vector<2x8x8xf32>
    %287 = arith.divf %283, %286 : vector<2x8x8xf32>
    "tpu.trace_start"() <{level = 10 : i32, message = "bqk,bkd->bqd"}> : () -> ()
    %cst_124 = arith.constant dense<0.000000e+00> : vector<2x8x8xf32>
    %288 = tpu.matmul %287, %276, %cst_124 {dimension_numbers = #tpu.dot_dimension_numbers<[2], [1], [1], [2], [0, 0, 0, 1, 1, 2], [0], [0]>} : vector<2x8x8xf32>, vector<2x8x8xf32>, vector<2x8x8xf32> -> vector<2x8x8xf32>
    "tpu.trace_stop"() : () -> ()
    %289 = vector.shape_cast %288 : vector<2x8x8xf32> to vector<16x8xf32>
    %290 = vector.extract_strided_slice %245 {offsets = [8, 0], sizes = [8, 32], strides = [1, 1]} : vector<32x32xf32> to vector<8x32xf32>
    %cst_125 = arith.constant dense<0.000000e+00> : vector<16x32xf32>
    %291 = tpu.matmul %289, %290, %cst_125 {dimension_numbers = #tpu.dot_dimension_numbers<[1], [0], [0], [1], [0, 0, 1, 1], [], []>} : vector<16x8xf32>, vector<8x32xf32>, vector<16x32xf32> -> vector<16x32xf32>
    %292 = arith.addf %270, %291 : vector<16x32xf32>
    %293 = vector.extract_strided_slice %243 {offsets = [0, 16], sizes = [16, 8], strides = [1, 1]} : vector<16x96xf32> to vector<16x8xf32>
    %294 = vector.shape_cast %293 : vector<16x8xf32> to vector<2x8x8xf32>
    %295 = vector.extract_strided_slice %243 {offsets = [0, 48], sizes = [16, 8], strides = [1, 1]} : vector<16x96xf32> to vector<16x8xf32>
    %296 = vector.shape_cast %295 : vector<16x8xf32> to vector<2x8x8xf32>
    %297 = vector.extract_strided_slice %243 {offsets = [0, 80], sizes = [16, 8], strides = [1, 1]} : vector<16x96xf32> to vector<16x8xf32>
    %298 = vector.shape_cast %297 : vector<16x8xf32> to vector<2x8x8xf32>
    "tpu.trace_start"() <{level = 10 : i32, message = "bqd,bkd->bqk"}> : () -> ()
    %cst_126 = arith.constant dense<0.000000e+00> : vector<2x8x8xf32>
    %299 = tpu.matmul %294, %296, %cst_126 {dimension_numbers = #tpu.dot_dimension_numbers<[2], [2], [1], [1], [0, 0, 0, 1, 1, 1], [0], [0]>} : vector<2x8x8xf32>, vector<2x8x8xf32>, vector<2x8x8xf32> -> vector<2x8x8xf32>
    "tpu.trace_stop"() : () -> ()
    %300 = arith.addf %299, %55 : vector<2x8x8xf32>
    %cst_127 = arith.constant dense<0xFF800000> : vector<2x8xf32>
    %301 = vector.multi_reduction <maximumf>, %300, %cst_127 [2] : vector<2x8x8xf32> to vector<2x8xf32>
    %302 = vector.shape_cast %301 : vector<2x8xf32> to vector<2x8x1xf32>
    %303 = vector.broadcast %302 : vector<2x8x1xf32> to vector<2x8x8xf32>
    %304 = arith.subf %300, %303 : vector<2x8x8xf32>
    %305 = math.exp %304 : vector<2x8x8xf32>
    %cst_128 = arith.constant dense<0.000000e+00> : vector<2x8xf32>
    %306 = vector.multi_reduction <add>, %305, %cst_128 [2] : vector<2x8x8xf32> to vector<2x8xf32>
    %307 = vector.shape_cast %306 : vector<2x8xf32> to vector<2x8x1xf32>
    %308 = vector.broadcast %307 : vector<2x8x1xf32> to vector<2x8x8xf32>
    %309 = arith.divf %305, %308 : vector<2x8x8xf32>
    "tpu.trace_start"() <{level = 10 : i32, message = "bqk,bkd->bqd"}> : () -> ()
    %cst_129 = arith.constant dense<0.000000e+00> : vector<2x8x8xf32>
    %310 = tpu.matmul %309, %298, %cst_129 {dimension_numbers = #tpu.dot_dimension_numbers<[2], [1], [1], [2], [0, 0, 0, 1, 1, 2], [0], [0]>} : vector<2x8x8xf32>, vector<2x8x8xf32>, vector<2x8x8xf32> -> vector<2x8x8xf32>
    "tpu.trace_stop"() : () -> ()
    %311 = vector.shape_cast %310 : vector<2x8x8xf32> to vector<16x8xf32>
    %312 = vector.extract_strided_slice %245 {offsets = [16, 0], sizes = [8, 32], strides = [1, 1]} : vector<32x32xf32> to vector<8x32xf32>
    %cst_130 = arith.constant dense<0.000000e+00> : vector<16x32xf32>
    %313 = tpu.matmul %311, %312, %cst_130 {dimension_numbers = #tpu.dot_dimension_numbers<[1], [0], [0], [1], [0, 0, 1, 1], [], []>} : vector<16x8xf32>, vector<8x32xf32>, vector<16x32xf32> -> vector<16x32xf32>
    %314 = arith.addf %292, %313 : vector<16x32xf32>
    %315 = vector.extract_strided_slice %243 {offsets = [0, 24], sizes = [16, 8], strides = [1, 1]} : vector<16x96xf32> to vector<16x8xf32>
    %316 = vector.shape_cast %315 : vector<16x8xf32> to vector<2x8x8xf32>
    %317 = vector.extract_strided_slice %243 {offsets = [0, 56], sizes = [16, 8], strides = [1, 1]} : vector<16x96xf32> to vector<16x8xf32>
    %318 = vector.shape_cast %317 : vector<16x8xf32> to vector<2x8x8xf32>
    %319 = vector.extract_strided_slice %243 {offsets = [0, 88], sizes = [16, 8], strides = [1, 1]} : vector<16x96xf32> to vector<16x8xf32>
    %320 = vector.shape_cast %319 : vector<16x8xf32> to vector<2x8x8xf32>
    "tpu.trace_start"() <{level = 10 : i32, message = "bqd,bkd->bqk"}> : () -> ()
    %cst_131 = arith.constant dense<0.000000e+00> : vector<2x8x8xf32>
    %321 = tpu.matmul %316, %318, %cst_131 {dimension_numbers = #tpu.dot_dimension_numbers<[2], [2], [1], [1], [0, 0, 0, 1, 1, 1], [0], [0]>} : vector<2x8x8xf32>, vector<2x8x8xf32>, vector<2x8x8xf32> -> vector<2x8x8xf32>
    "tpu.trace_stop"() : () -> ()
    %322 = arith.addf %321, %55 : vector<2x8x8xf32>
    %cst_132 = arith.constant dense<0xFF800000> : vector<2x8xf32>
    %323 = vector.multi_reduction <maximumf>, %322, %cst_132 [2] : vector<2x8x8xf32> to vector<2x8xf32>
    %324 = vector.shape_cast %323 : vector<2x8xf32> to vector<2x8x1xf32>
    %325 = vector.broadcast %324 : vector<2x8x1xf32> to vector<2x8x8xf32>
    %326 = arith.subf %322, %325 : vector<2x8x8xf32>
    %327 = math.exp %326 : vector<2x8x8xf32>
    %cst_133 = arith.constant dense<0.000000e+00> : vector<2x8xf32>
    %328 = vector.multi_reduction <add>, %327, %cst_133 [2] : vector<2x8x8xf32> to vector<2x8xf32>
    %329 = vector.shape_cast %328 : vector<2x8xf32> to vector<2x8x1xf32>
    %330 = vector.broadcast %329 : vector<2x8x1xf32> to vector<2x8x8xf32>
    %331 = arith.divf %327, %330 : vector<2x8x8xf32>
    "tpu.trace_start"() <{level = 10 : i32, message = "bqk,bkd->bqd"}> : () -> ()
    %cst_134 = arith.constant dense<0.000000e+00> : vector<2x8x8xf32>
    %332 = tpu.matmul %331, %320, %cst_134 {dimension_numbers = #tpu.dot_dimension_numbers<[2], [1], [1], [2], [0, 0, 0, 1, 1, 2], [0], [0]>} : vector<2x8x8xf32>, vector<2x8x8xf32>, vector<2x8x8xf32> -> vector<2x8x8xf32>
    "tpu.trace_stop"() : () -> ()
    %333 = vector.shape_cast %332 : vector<2x8x8xf32> to vector<16x8xf32>
    %334 = vector.extract_strided_slice %245 {offsets = [24, 0], sizes = [8, 32], strides = [1, 1]} : vector<32x32xf32> to vector<8x32xf32>
    %cst_135 = arith.constant dense<0.000000e+00> : vector<16x32xf32>
    %335 = tpu.matmul %333, %334, %cst_135 {dimension_numbers = #tpu.dot_dimension_numbers<[1], [0], [0], [1], [0, 0, 1, 1], [], []>} : vector<16x8xf32>, vector<8x32xf32>, vector<16x32xf32> -> vector<16x32xf32>
    %336 = arith.addf %314, %335 : vector<16x32xf32>
    %337 = arith.addf %336, %236 : vector<16x32xf32>
    %c1_136 = arith.constant 1 : index
    %c0_137 = arith.constant 0 : index
    %c0_138 = arith.constant 0 : index
    %338 = vector.load %arg12[%c1_136, %c0_137, %c0_138] : memref<2x1x32xf32, #tpu.memory_space<vmem>>, vector<1x1x32xf32>
    %339 = vector.shape_cast %338 : vector<1x1x32xf32> to vector<1x32xf32>
    %c1_139 = arith.constant 1 : index
    %c0_140 = arith.constant 0 : index
    %c0_141 = arith.constant 0 : index
    %340 = vector.load %arg13[%c1_139, %c0_140, %c0_141] : memref<2x1x32xf32, #tpu.memory_space<vmem>>, vector<1x1x32xf32>
    %341 = vector.shape_cast %340 : vector<1x1x32xf32> to vector<1x32xf32>
    %cst_142 = arith.constant dense<0.000000e+00> : vector<16xf32>
    %342 = vector.multi_reduction <add>, %337, %cst_142 [1] : vector<16x32xf32> to vector<16xf32>
    %343 = vector.shape_cast %342 : vector<16xf32> to vector<16x1xf32>
    %cst_143 = arith.constant 3.200000e+01 : f32
    %344 = vector.broadcast %cst_143 : f32 to vector<16x1xf32>
    %345 = arith.divf %343, %344 : vector<16x1xf32>
    %346 = vector.broadcast %345 : vector<16x1xf32> to vector<16x32xf32>
    %347 = arith.subf %337, %346 : vector<16x32xf32>
    %348 = arith.mulf %347, %347 : vector<16x32xf32>
    %cst_144 = arith.constant dense<0.000000e+00> : vector<16xf32>
    %349 = vector.multi_reduction <add>, %348, %cst_144 [1] : vector<16x32xf32> to vector<16xf32>
    %350 = vector.shape_cast %349 : vector<16xf32> to vector<16x1xf32>
    %cst_145 = arith.constant 3.200000e+01 : f32
    %351 = vector.broadcast %cst_145 : f32 to vector<16x1xf32>
    %352 = arith.divf %350, %351 : vector<16x1xf32>
    %353 = vector.broadcast %345 : vector<16x1xf32> to vector<16x32xf32>
    %354 = arith.subf %337, %353 : vector<16x32xf32>
    %cst_146 = arith.constant 9.99999974E-6 : f32
    %355 = vector.broadcast %cst_146 : f32 to vector<16x1xf32>
    %356 = arith.addf %352, %355 : vector<16x1xf32>
    %357 = math.rsqrt %356 : vector<16x1xf32>
    %358 = vector.broadcast %357 : vector<16x1xf32> to vector<16x32xf32>
    %359 = arith.mulf %354, %358 : vector<16x32xf32>
    %360 = vector.broadcast %339 : vector<1x32xf32> to vector<16x32xf32>
    %361 = arith.mulf %359, %360 : vector<16x32xf32>
    %362 = vector.broadcast %341 : vector<1x32xf32> to vector<16x32xf32>
    %363 = arith.addf %361, %362 : vector<16x32xf32>
    %c1_147 = arith.constant 1 : index
    %c0_148 = arith.constant 0 : index
    %c0_149 = arith.constant 0 : index
    %364 = vector.load %arg14[%c1_147, %c0_148, %c0_149] : memref<2x32x64xf32, #tpu.memory_space<vmem>>, vector<1x32x64xf32>
    %365 = vector.shape_cast %364 : vector<1x32x64xf32> to vector<32x64xf32>
    %cst_150 = arith.constant dense<0.000000e+00> : vector<16x64xf32>
    %366 = tpu.matmul %363, %365, %cst_150 {dimension_numbers = #tpu.dot_dimension_numbers<[1], [0], [0], [1], [0, 0, 1, 1], [], []>} : vector<16x32xf32>, vector<32x64xf32>, vector<16x64xf32> -> vector<16x64xf32>
    %c1_151 = arith.constant 1 : index
    %c0_152 = arith.constant 0 : index
    %c0_153 = arith.constant 0 : index
    %367 = vector.load %arg15[%c1_151, %c0_152, %c0_153] : memref<2x1x64xf32, #tpu.memory_space<vmem>>, vector<1x1x64xf32>
    %368 = vector.shape_cast %367 : vector<1x1x64xf32> to vector<1x64xf32>
    %369 = vector.broadcast %368 : vector<1x64xf32> to vector<16x64xf32>
    %370 = arith.addf %366, %369 : vector<16x64xf32>
    %371 = arith.mulf %370, %370 : vector<16x64xf32>
    %372 = arith.mulf %370, %371 : vector<16x64xf32>
    %cst_154 = arith.constant 4.471500e-02 : f32
    %373 = vector.broadcast %cst_154 : f32 to vector<16x64xf32>
    %374 = arith.mulf %373, %372 : vector<16x64xf32>
    %375 = arith.addf %370, %374 : vector<16x64xf32>
    %cst_155 = arith.constant 0.797884583 : f32
    %376 = vector.broadcast %cst_155 : f32 to vector<16x64xf32>
    %377 = arith.mulf %376, %375 : vector<16x64xf32>
    %378 = math.tanh %377 : vector<16x64xf32>
    %cst_156 = arith.constant 1.000000e+00 : f32
    %379 = vector.broadcast %cst_156 : f32 to vector<16x64xf32>
    %380 = arith.addf %379, %378 : vector<16x64xf32>
    %cst_157 = arith.constant 5.000000e-01 : f32
    %381 = vector.broadcast %cst_157 : f32 to vector<16x64xf32>
    %382 = arith.mulf %381, %380 : vector<16x64xf32>
    %383 = arith.mulf %370, %382 : vector<16x64xf32>
    %c1_158 = arith.constant 1 : index
    %c0_159 = arith.constant 0 : index
    %c0_160 = arith.constant 0 : index
    %384 = vector.load %arg16[%c1_158, %c0_159, %c0_160] : memref<2x64x32xf32, #tpu.memory_space<vmem>>, vector<1x64x32xf32>
    %385 = vector.shape_cast %384 : vector<1x64x32xf32> to vector<64x32xf32>
    %cst_161 = arith.constant dense<0.000000e+00> : vector<16x32xf32>
    %386 = tpu.matmul %383, %385, %cst_161 {dimension_numbers = #tpu.dot_dimension_numbers<[1], [0], [0], [1], [0, 0, 1, 1], [], []>} : vector<16x64xf32>, vector<64x32xf32>, vector<16x32xf32> -> vector<16x32xf32>
    %c1_162 = arith.constant 1 : index
    %c0_163 = arith.constant 0 : index
    %c0_164 = arith.constant 0 : index
    %387 = vector.load %arg17[%c1_162, %c0_163, %c0_164] : memref<2x1x32xf32, #tpu.memory_space<vmem>>, vector<1x1x32xf32>
    %388 = vector.shape_cast %387 : vector<1x1x32xf32> to vector<1x32xf32>
    %389 = vector.broadcast %388 : vector<1x32xf32> to vector<16x32xf32>
    %390 = arith.addf %386, %389 : vector<16x32xf32>
    %391 = arith.addf %390, %363 : vector<16x32xf32>
    %c1_165 = arith.constant 1 : index
    %c0_166 = arith.constant 0 : index
    %c0_167 = arith.constant 0 : index
    %392 = vector.load %arg18[%c1_165, %c0_166, %c0_167] : memref<2x1x32xf32, #tpu.memory_space<vmem>>, vector<1x1x32xf32>
    %393 = vector.shape_cast %392 : vector<1x1x32xf32> to vector<1x32xf32>
    %c1_168 = arith.constant 1 : index
    %c0_169 = arith.constant 0 : index
    %c0_170 = arith.constant 0 : index
    %394 = vector.load %arg19[%c1_168, %c0_169, %c0_170] : memref<2x1x32xf32, #tpu.memory_space<vmem>>, vector<1x1x32xf32>
    %395 = vector.shape_cast %394 : vector<1x1x32xf32> to vector<1x32xf32>
    %cst_171 = arith.constant dense<0.000000e+00> : vector<16xf32>
    %396 = vector.multi_reduction <add>, %391, %cst_171 [1] : vector<16x32xf32> to vector<16xf32>
    %397 = vector.shape_cast %396 : vector<16xf32> to vector<16x1xf32>
    %cst_172 = arith.constant 3.200000e+01 : f32
    %398 = vector.broadcast %cst_172 : f32 to vector<16x1xf32>
    %399 = arith.divf %397, %398 : vector<16x1xf32>
    %400 = vector.broadcast %399 : vector<16x1xf32> to vector<16x32xf32>
    %401 = arith.subf %391, %400 : vector<16x32xf32>
    %402 = arith.mulf %401, %401 : vector<16x32xf32>
    %cst_173 = arith.constant dense<0.000000e+00> : vector<16xf32>
    %403 = vector.multi_reduction <add>, %402, %cst_173 [1] : vector<16x32xf32> to vector<16xf32>
    %404 = vector.shape_cast %403 : vector<16xf32> to vector<16x1xf32>
    %cst_174 = arith.constant 3.200000e+01 : f32
    %405 = vector.broadcast %cst_174 : f32 to vector<16x1xf32>
    %406 = arith.divf %404, %405 : vector<16x1xf32>
    %407 = vector.broadcast %399 : vector<16x1xf32> to vector<16x32xf32>
    %408 = arith.subf %391, %407 : vector<16x32xf32>
    %cst_175 = arith.constant 9.99999974E-6 : f32
    %409 = vector.broadcast %cst_175 : f32 to vector<16x1xf32>
    %410 = arith.addf %406, %409 : vector<16x1xf32>
    %411 = math.rsqrt %410 : vector<16x1xf32>
    %412 = vector.broadcast %411 : vector<16x1xf32> to vector<16x32xf32>
    %413 = arith.mulf %408, %412 : vector<16x32xf32>
    %414 = vector.broadcast %393 : vector<1x32xf32> to vector<16x32xf32>
    %415 = arith.mulf %413, %414 : vector<16x32xf32>
    %416 = vector.broadcast %395 : vector<1x32xf32> to vector<16x32xf32>
    %417 = arith.addf %415, %416 : vector<16x32xf32>
    %418 = vector.shape_cast %417 : vector<16x32xf32> to vector<2x8x32xf32>
    %419 = vector.extract_strided_slice %418 {offsets = [0, 0, 0], sizes = [2, 1, 32], strides = [1, 1, 1]} : vector<2x8x32xf32> to vector<2x1x32xf32>
    %420 = vector.shape_cast %419 : vector<2x1x32xf32> to vector<2x32xf32>
    %c0_176 = arith.constant 0 : index
    %c0_177 = arith.constant 0 : index
    %421 = vector.load %arg20[%c0_176, %c0_177] : memref<32x32xf32, #tpu.memory_space<vmem>>, vector<32x32xf32>
    %cst_178 = arith.constant dense<0.000000e+00> : vector<2x32xf32>
    %422 = tpu.matmul %420, %421, %cst_178 {dimension_numbers = #tpu.dot_dimension_numbers<[1], [0], [0], [1], [0, 0, 1, 1], [], []>} : vector<2x32xf32>, vector<32x32xf32>, vector<2x32xf32> -> vector<2x32xf32>
    %c0_179 = arith.constant 0 : index
    %c0_180 = arith.constant 0 : index
    %423 = vector.load %arg21[%c0_179, %c0_180] : memref<1x32xf32, #tpu.memory_space<vmem>>, vector<1x32xf32>
    %424 = vector.broadcast %423 : vector<1x32xf32> to vector<2x32xf32>
    %425 = arith.addf %422, %424 : vector<2x32xf32>
    %426 = math.tanh %425 : vector<2x32xf32>
    %c0_181 = arith.constant 0 : index
    %c0_182 = arith.constant 0 : index
    %427 = vector.load %arg22[%c0_181, %c0_182] : memref<2x32xf32, #tpu.memory_space<vmem>>, vector<2x32xf32>
    tpu.vector_store %arg22[%c0_181, %c0_182], %426 {strides = array<i32>} : memref<2x32xf32, #tpu.memory_space<vmem>>, vector<2x32xf32>,
    return
  }
}

</mosaic_0001>

<bundles_post_ra>
// kernel: model_forward_code.1
= control target key start
LH: loop header
LB: loop body
LE: loop exit
PB: predicated region body
PF: predicated region fallthrough
CT: control target
= control target key end

     0   :  { %s6111_s0 = inlined_call_operand.vmem [shape: f32[2,8,32], index: 0, kind: input, shape index: {}]   ;;  %s6112_s1 = inlined_call_operand.vmem [shape: f32[2,8,32], index: 1, kind: input, shape index: {}]   ;;  %s6113_s2 = inlined_call_operand.vmem [shape: f32[1,1,32], index: 2, kind: input, shape index: {}]   ;;  %s6114_s3 = inlined_call_operand.vmem [shape: f32[2,8,1], index: 3, kind: input, shape index: {}]   ;;  %s6115_s4 = inlined_call_operand.vmem [shape: f32[2,1,8], index: 4, kind: input, shape index: {}]   ;;  %s6116_s5 = inlined_call_operand.vmem [shape: f32[2,8,8], index: 5, kind: input, shape index: {}]   ;;  %s6117_s6 = inlined_call_operand.vmem [shape: f32[1,32], index: 6, kind: input, shape index: {}]   ;;  %s6118_s7 = inlined_call_operand.vmem [shape: f32[1,32], index: 7, kind: input, shape index: {}]   ;;  %s6119_s8 = inlined_call_operand.vmem [shape: f32[2,32,96], index: 8, kind: input, shape index: {}]   ;;  %s6120_s9 = inlined_call_operand.vmem [shape: f32[2,1,96], index: 9, kind: input, shape index: {}]   ;;  %s6121_s10 = inlined_call_operand.vmem [shape: f32[2,32,32], index: 10, kind: input, shape index: {}]   ;;  %s6122_s11 = inlined_call_operand.vmem [shape: f32[2,1,32], index: 11, kind: input, shape index: {}]   ;;  %s6123_s12 = inlined_call_operand.vmem [shape: f32[2,1,32], index: 12, kind: input, shape index: {}]   ;;  %s6124_s13 = inlined_call_operand.vmem [shape: f32[2,1,32], index: 13, kind: input, shape index: {}]   ;;  %s6125_s14 = inlined_call_operand.vmem [shape: f32[2,32,64], index: 14, kind: input, shape index: {}]   ;;  %s6126_s15 = inlined_call_operand.vmem [shape: f32[2,1,64], index: 15, kind: input, shape index: {}]   ;;  %s6127_s16 = inlined_call_operand.vmem [shape: f32[2,64,32], index: 16, kind: input, shape index: {}]   ;;  %s6128_s17 = inlined_call_operand.vmem [shape: f32[2,1,32], index: 17, kind: input, shape index: {}]   ;;  %s6129_s18 = inlined_call_operand.vmem [shape: f32[2,1,32], index: 18, kind: input, shape index: {}]   ;;  %s6130_s19 = inlined_call_operand.vmem [shape: f32[2,1,32], index: 19, kind: input, shape index: {}]   ;;  %s6131_s20 = inlined_call_operand.vmem [shape: f32[32,32], index: 20, kind: input, shape index: {}]   ;;  %s6132_s21 = inlined_call_operand.vmem [shape: f32[1,32], index: 21, kind: input, shape index: {}]   ;;  %s6133_s22 = inlined_call_operand.hbm [shape: f32[2,32], index: 22, kind: output, shape index: {}]  }
   0x1   :  { %6145 = sst [smem:[#allocation5_spill]] %s6111_s0 }
   0x2   :  { %6146 = sst [smem:[#allocation6_spill]] %s6112_s1 }
   0x3   :  { %6147 = sst [smem:[#allocation7_spill]] %s6113_s2 }
   0x4   :  { %6148 = sst [smem:[#allocation8_spill]] %s6114_s3 }
   0x5   :  { %6149 = sst [smem:[#allocation9_spill]] %s6115_s4 }
   0x6   :  { %6150 = sst [smem:[#allocation10_spill]] %s6116_s5 }
   0x7   :  { %6151 = sst [smem:[#allocation11_spill]] %s6117_s6 }
   0x8   :  { %s6152_s29 = sld [smem:[#allocation8_spill]]  ;;  %v5365_v1 = vmov 0  }
   0x9   :  { %5241 = vset.pattern.permute.xlu0 %v5365_v1  ;;  %5242 = vset.pattern.permute.xlu1 %v5365_v1 }
   0xe   :  { %v76_v0 = vld [vmem:[%s6152_s29] sm:$0xff] }
   0xf   :  { %27 = vsyncpa [#allocation3], 0  ;;  %82 = vperm.xlu0 %5241, %v76_v0   ;;  %v77_v2 = vld [vmem:[%s6152_s29 + $0x8] sm:$0xff]  ;;  %v265_v3 = vsub.f32 1.0, %v76_v0  ;;  %s6153_s1 = sld [smem:[#allocation9_spill]]  ;;  %s6154_s6 = sld [smem:[#allocation10_spill]] }
  0x10   :  { %vm106_vm0 = vcmask 64512   ;;  %v266_v16 = vsub.f32 1.0, %v77_v2  ;;  %v5366_v17 = vmov 0.0   ;;  %s6155_s29 = sld [smem:[#allocation5_spill]]  ;;  %vm5367_vm1 = vmmov 0   ;;  %v346_v59 = vld [vmem:[%s6119_s8] sm:$0xff] }
  0x11   :  { %4836 = vmatprep.subr.mxu0 %v5366_v17  ;;  %4838 = vmatprep.mubr.msk.f32.mxu0 %vm5367_vm1, %v5366_v17  ;;  %vm298_vm2 = vcmask 261120   ;;  %v347_v60 = vld [vmem:[%s6119_s8 + $0x8] sm:$0xff]  ;;  %v348_v62 = vld [vmem:[%s6119_s8 + $0x10] sm:$0xff]  ;;  %v349_v63 = vld [vmem:[%s6119_s8 + $0x18] sm:$0xff]  ;;  %s6158_s5 = sld [smem:[#allocation11_spill]]  ;;  %s5369_s2 = smov 64  }
  0x12   :  { %4841 = vmatprep.subr.mxu1 %v5366_v17  ;;  %4843 = vmatprep.mubr.msk.f32.mxu1 %vm5367_vm1, %v5366_v17  ;;  %v5139_v61 = vpack.c.bf16 %v347_v60, %v346_v59  ;;  %v5143_v0 = vpack.c.bf16 %v349_v63, %v348_v62  ;;  %s5370_s27 = smov 88   ;;  %s5371_s3 = smov 120   ;;  %vm2270_vm3 = vcmask 523264   ;;  %vm4475_vm4 = vcmask 1041409  }
  0x13   :  { %87 = vperm.xlu0 %5241, %v77_v2   ;;  %s5372_s30 = smov 80   ;;  %s5373_s4 = smov 112   ;;  %vm4550_vm5 = vcmask 254976  }
  0x14   :  { %s5374_s0 = smov 56   ;;  %s5375_s23 = smov 48  }
  0x15   :  { %v4566_v4 = vld [vmem:[%s6153_s1] ss:$0 sm:$0xff]  ;;  %v4567_v8 = vld [vmem:[%s6153_s1 + $0x1] ss:$0 sm:$0xff]  ;;  %v5517_v11 = vld [vmem:[%s6154_s6 + $0x8] sm:$0xff]  ;;  %s6156_s1 = sld [smem:[#allocation6_spill]] }
  0x16   :  { %v5508_v6 = vld [vmem:[%s6154_s6] sm:$0xff]  ;;  %v73_v19 = vld [vmem:[%s6155_s29 + $0x8] sm:$0xff]  ;;  %s6157_s6 = sld [smem:[#allocation7_spill]]  ;;  %s6139_s28 = smov 40  }
  0x17   :  { %269 = vperm.xlu0 %5241, %v265_v3   ;;  %v72_v18 = vld [vmem:[%s6155_s29] sm:$0xff]  ;;  %4842 = vmatpush3.msra.mxu1 %v73_v19 }
  0x18   :  { %4837 = vmatpush3.msra.mxu0 %v72_v18  ;;  %4857 = vmatprep.subr.mxu1 %v5366_v17 }
  0x19   :  { %5140 = vmatprep.subr.bf16.mxu0 %v5139_v61 }
  0x1b   :  { %v283_v34 = vld [vmem:[%s6156_s1] sm:$0xff]  ;;  %v284_v42 = vld [vmem:[%s6156_s1 + $0x8] sm:$0xff]  ;;  %s6143_s1 = smov 72  }
  0x1c   :  { %v4570_v38 = vld [vmem:[%s6157_s6] ss:$0 sm:$0xff] }
  0x8e   :  { %v83_v5 = vpop.permute.xlu0 %82 }
  0x8f   :  { %v102_v7 = vmul.f32 %v4566_v4, %v83_v5 }
  0x91   :  { %v104_v9 = vmul.f32 %v102_v7, %v5508_v6 }
  0x92   :  { %v88_v10 = vpop.permute.xlu0 %87 }
  0x93   :  { %v103_v12 = vmul.f32 %v4567_v8, %v88_v10  ;;  %v107_v13 = vsel %vm106_vm0, %v104_v9, 0.0 }
  0x94   :  { %108 = vadd.xlane.f32.xlu1 %v107_v13 }
  0x95   :  { %v105_v14 = vmul.f32 %v103_v12, %v5517_v11  ;;  %v4572_v12 = vld [vmem:[%s6118_s7] ss:$0 sm:$0xff]  ;;  %s5368_s7 = smov 96  }
  0x96   :  { %v270_v28 = vpop.permute.xlu0 %269 }
  0x97   :  { %v110_v15 = vsel %vm106_vm0, %v105_v14, 0.0  ;;  %v277_v31 = vmul.f32 %v270_v28, %v72_v18 }
  0x98   :  { %111 = vadd.xlane.f32.xlu1 %v110_v15 }
  0xa9   :  { %274 = vperm.xlu1 %5242, %v266_v16  }
 0x121   :  { %v109_v20 = vpop.xlane.xlu1 %108 }
 0x122   :  { %v113_v21 = vadd.f32 1e-10, %v109_v20  ;;  %v4573_v20 = vld [vmem:[%s6120_s9] ss:$0 sm:$0xff] }
 0x124   :  { %5243 = vrcp.f32 %v113_v21 }
 0x125   :  { %v112_v22 = vpop.xlane.xlu1 %111 }
 0x126   :  { %v114_v23 = vadd.f32 1e-10, %v112_v22 }
 0x128   :  { %5245 = vrcp.f32 %v114_v23 }
 0x129   :  { %v275_v30 = vpop.permute.xlu1 %274 }
 0x12a   :  { %v278_v36 = vmul.f32 %v275_v30, %v73_v19 }
 0x12e   :  { %v5244_v24 = vpop.eup %5243 }
 0x12f   :  { %v116_v25 = vmul.f32 %v5244_v24, %v104_v9  ;;  %v4571_v9 = vld [vmem:[%s6158_s5] ss:$0 sm:$0xff]  ;;  %s6141_s5 = smov 104  }
 0x131   :  { %4839 = vmatmul.mubr.msk.f32.vlgmr.msra.gmra.mrb[0].mxu0 %vm106_vm0, %v116_v25 }
 0x132   :  { %v5246_v26 = vpop.eup %5245  ;;  %5142 = vmatpush3.bf16.msra.mxu0 %v5139_v61 }
 0x133   :  { %v118_v27 = vmul.f32 %v5246_v26, %v105_v14  ;;  %5144 = vmatprep.subr.bf16.mxu0 %v5143_v0 }
 0x135   :  { %4844 = vmatmul.mubr.msk.f32.vlgmr.msra.gmra.mrb[0].mxu1 %vm106_vm0, %v118_v27  ;;  %v342_v27 = vsub.f32 1.0, %v5508_v6 }
 0x136   :  { %4859 = vmatprep.mubr.msk.f32.mxu1 %vm5367_vm1, %v5366_v17  ;;  %5146 = vmatpush3.bf16.msra.mxu0 %v5143_v0 }
 0x137   :  { %v5602_v28 = vmul.f32 -1e+09, %v342_v27 }
 0x204   :  { %v188_v29 = vpop.f32.mrb[0].mxu0 }
 0x205   :  { %v279_v32 = vmul.f32 %v188_v29, %v83_v5  ;;  %v4840_v33 = vpop.f32.mrb[1].mxu0  ;;  %v343_v29 = vsub.f32 1.0, %v5517_v11 }
 0x207   :  { %v281_v35 = vadd.f32 %v279_v32, %v277_v31  ;;  %v5605_v31 = vmul.f32 -1e+09, %v343_v29 }
 0x208   :  { %v261_v37 = vpop.f32.mrb[0].mxu1 }
 0x209   :  { %v280_v39 = vmul.f32 %v261_v37, %v88_v10  ;;  %v4845_v40 = vpop.f32.mrb[1].mxu1  ;;  %v285_v41 = vadd.f32 %v283_v34, %v281_v35 }
 0x20b   :  { %v282_v43 = vadd.f32 %v280_v39, %v278_v36  ;;  %v294_v44 = vadd.f32 %v4570_v38, %v285_v41 }
 0x20d   :  { %v299_v45 = vsel %vm298_vm2, %v294_v44, 0.0  ;;  %v286_v46 = vadd.f32 %v284_v42, %v282_v43 }
 0x20e   :  { %300 = vadd.xlane.f32.xlu0 %v299_v45 }
 0x20f   :  { %v295_v47 = vadd.f32 %v4570_v38, %v286_v46 }
 0x211   :  { %v302_v48 = vsel %vm298_vm2, %v295_v47, 0.0 }
 0x212   :  { %303 = vadd.xlane.f32.xlu1 %v302_v48 }
 0x29b   :  { %v301_v49 = vpop.xlane.xlu0 %300 }
 0x29c   :  { %v306_v50 = vmul.f32 0.03125, %v301_v49 }
 0x29e   :  { %v308_v51 = vsub.f32 %v294_v44, %v306_v50 }
 0x29f   :  { %v304_v52 = vpop.xlane.xlu1 %303 }
 0x2a0   :  { %v307_v53 = vmul.f32 0.03125, %v304_v52  ;;  %v310_v54 = vmul.f32 %v308_v51, %v308_v51 }
 0x2a2   :  { %v309_v55 = vsub.f32 %v295_v47, %v307_v53  ;;  %v312_v56 = vsel %vm298_vm2, %v310_v54, 0.0  ;;  %v438_v47 = vld [vmem:[%s6121_s10] sm:$0xff] }
 0x2a3   :  { %313 = vadd.xlane.f32.xlu0 %v312_v56  ;;  %4877 = vmatprep.subr.mxu0 %v438_v47 }
 0x2a4   :  { %v311_v57 = vmul.f32 %v309_v55, %v309_v55 }
 0x2a6   :  { %v315_v58 = vsel %vm298_vm2, %v311_v57, 0.0 }
 0x2a7   :  { %316 = vadd.xlane.f32.xlu0 %v315_v58 }
 0x330   :  { %v314_v1 = vpop.xlane.xlu0 %313 }
 0x331   :  { %v318_v2 = vmul.f32 0.03125, %v314_v1 }
 0x333   :  { %v320_v3 = vadd.f32 1e-05, %v318_v2 }
 0x334   :  { %v317_v4 = vpop.xlane.xlu0 %316 }
 0x335   :  { %5247 = vrsqrt.f32 %v320_v3  ;;  %v319_v5 = vmul.f32 0.03125, %v317_v4 }
 0x337   :  { %v321_v7 = vadd.f32 1e-05, %v319_v5 }
 0x339   :  { %5249 = vrsqrt.f32 %v321_v7 }
 0x33f   :  { %v5248_v8 = vpop.eup %5247 }
 0x340   :  { %v324_v10 = vmul.f32 %v5248_v8, %v308_v51 }
 0x342   :  { %v332_v13 = vmul.f32 %v4571_v9, %v324_v10 }
 0x343   :  { %v5250_v14 = vpop.eup %5249 }
 0x344   :  { %v325_v15 = vmul.f32 %v5250_v14, %v309_v55  ;;  %v5570_v16 = vadd.f32 %v4572_v12, %v332_v13 }
 0x346   :  { %v333_v18 = vmul.f32 %v4571_v9, %v325_v15  ;;  %4854 = vmatprep.mubr.msk.f32.mxu0 %vm298_vm2, %v5570_v16 }
 0x348   :  { %v5574_v19 = vadd.f32 %v4572_v12, %v333_v18 }
 0x34a   :  { %4855 = vmatmul.mubr.msk.f32.vlgmr.msra.gmra.mrb[2].mxu0 %vm298_vm2, %v5574_v19 }
 0x34b   :  { %4878 = vmatpush3.msra.mxu0 %v438_v47  ;;  %v439_v47 = vld [vmem:[%s6121_s10 + $0x8] sm:$0xff] }
 0x34c   :  { %4887 = vmatprep.subr.mxu0 %v5366_v17 }
 0x41d   :  { %v4856_v21 = vpop.f32.mrb[2].mxu0 }
 0x41e   :  { %v5581_v22 = vadd.f32 %v4856_v21, %v4573_v20  ;;  %v429_v23 = vpop.f32.mrb[3].mxu0 }
 0x41f   :  { %v5583_v24 = vadd.f32 %v4573_v20, %v429_v23 }
 0x420   :  { %521 = vrot.lane.b32.xlu1 %v5581_v22, %s5368_s7 }
 0x421   :  { %444 = vrot.lane.b32.xlu0 %v5583_v24, %s5368_s7 }
 0x492   :  { %v522_v26 = vpop.permute.xlu1 %521 }
 0x493   :  { %v445_v25 = vpop.permute.xlu0 %444 }
 0x494   :  { %4858 = vmatpush3.xpose.msk.msra.mxu1 %vm106_vm0, %v445_v25 }
 0x495   :  { %4862 = vmatprep.subr.mxu1 %v5366_v17 }
 0x497   :  { %4860 = vmatmul.mubr.msk.f32.vlgmr.msra.gmra.mrb[2].mxu1 %vm106_vm0, %v5583_v24 }
 0x498   :  { %4863 = vmatpush3.xpose.msk.msra.mxu1 %vm106_vm0, %v522_v26  ;;  %4864 = vmatprep.mubr.msk.f32.mxu1 %vm5367_vm1, %v5366_v17 }
 0x499   :  { %4867 = vmatprep.subr.mxu1 %v5366_v17 }
 0x49b   :  { %4865 = vmatmul.mubr.msk.f32.vlgmr.msra.gmra.mrb[4].mxu1 %vm106_vm0, %v5581_v22 }
 0x49c   :  { %4869 = vmatprep.mubr.msk.f32.mxu1 %vm5367_vm1, %v5366_v17 }
 0x56a   :  { %v516_v30 = vpop.f32.mrb[2].mxu1 }
 0x56b   :  { %v517_v32 = vadd.f32 %v516_v30, %v5602_v28  ;;  %v4861_v33 = vpop.f32.mrb[3].mxu1 }
 0x56d   :  { %v597_v34 = vsel %vm106_vm0, %v517_v32, -inf }
 0x56e   :  { %598 = vmax.xlane.f32.xlu0 %v597_v34  ;;  %v593_v35 = vpop.f32.mrb[4].mxu1 }
 0x56f   :  { %v594_v36 = vadd.f32 %v593_v35, %v5605_v31  ;;  %v4866_v37 = vpop.f32.mrb[5].mxu1 }
 0x571   :  { %v600_v38 = vsel %vm106_vm0, %v594_v36, -inf }
 0x572   :  { %601 = vmax.xlane.f32.xlu1 %v600_v38 }
 0x583   :  { %695 = vrot.lane.b32.xlu1 %v5581_v22, %s5369_s2 }
 0x587   :  { %862 = vrot.lane.b32.xlu1 %v5583_v24, %s5370_s27 }
 0x58b   :  { %940 = vrot.lane.b32.xlu1 %v5581_v22, %s5370_s27 }
 0x5fb   :  { %v599_v6 = vpop.xlane.xlu0 %598 }
 0x5fc   :  { %v603_v11 = vsub.f32 %v517_v32, %v599_v6 }
 0x5fe   :  { %v605_v39 = vmul.f32 1.442695, %v603_v11 }
 0x5ff   :  { %v602_v40 = vpop.xlane.xlu1 %601 }
 0x600   :  { %5251 = vpow2.f32 %v605_v39  ;;  %v604_v41 = vsub.f32 %v594_v36, %v602_v40 }
 0x602   :  { %v607_v42 = vmul.f32 1.442695, %v604_v41 }
 0x603   :  { %v696_v53 = vpop.permute.xlu1 %695 }
 0x604   :  { %5253 = vpow2.f32 %v607_v42 }
 0x607   :  { %v863_v56 = vpop.permute.xlu1 %862 }
 0x60a   :  { %v5252_v43 = vpop.eup %5251 }
 0x60b   :  { %v609_v44 = vsel %vm106_vm0, %v5252_v43, 0.0  ;;  %v941_v61 = vpop.permute.xlu1 %940 }
 0x60c   :  { %610 = vadd.xlane.f32.xlu0 %v609_v44 }
 0x60e   :  { %v5254_v45 = vpop.eup %5253 }
 0x60f   :  { %v612_v46 = vsel %vm106_vm0, %v5254_v45, 0.0 }
 0x610   :  { %613 = vadd.xlane.f32.xlu0 %v612_v46 }
 0x626   :  { %619 = vrot.lane.b32.xlu0 %v5583_v24, %s5369_s2 }
 0x62a   :  { %860 = vrot.lane.b32.xlu0 %v5583_v24, %s5371_s3 }
 0x62e   :  { %938 = vrot.lane.b32.xlu0 %v5581_v22, %s5371_s3 }
 0x699   :  { %v611_v48 = vpop.xlane.xlu0 %610 }
 0x69a   :  { %5255 = vrcp.f32 %v611_v48 }
 0x69d   :  { %v614_v49 = vpop.xlane.xlu0 %613 }
 0x69e   :  { %5257 = vrcp.f32 %v614_v49 }
 0x6a1   :  { %v620_v50 = vpop.permute.xlu0 %619 }
 0x6a2   :  { %4868 = vmatpush3.msra.mxu1 %v620_v50 }
 0x6a3   :  { %4872 = vmatprep.subr.mxu1 %v5366_v17 }
 0x6a4   :  { %v5256_v51 = vpop.eup %5255 }
 0x6a5   :  { %v616_v52 = vmul.f32 %v5256_v51, %v5252_v43  ;;  %v861_v57 = vpop.permute.xlu0 %860 }
 0x6a7   :  { %4870 = vmatmul.mubr.msk.f32.vlgmr.msra.gmra.mrb[6].mxu1 %vm106_vm0, %v616_v52 }
 0x6a8   :  { %v5258_v54 = vpop.eup %5257  ;;  %4873 = vmatpush3.msra.mxu1 %v696_v53  ;;  %4874 = vmatprep.mubr.msk.f32.mxu1 %vm5367_vm1, %v5366_v17 }
 0x6a9   :  { %v618_v55 = vmul.f32 %v5258_v54, %v5254_v45  ;;  %4882 = vmatprep.subr.mxu1 %v5366_v17  ;;  %v939_v63 = vpop.permute.xlu0 %938 }
 0x6ab   :  { %4875 = vmatmul.mubr.msk.f32.vlgmr.msra.gmra.mrb[8].mxu1 %vm106_vm0, %v618_v55 }
 0x6ac   :  { %4884 = vmatprep.mubr.msk.f32.mxu1 %vm5367_vm1, %v5366_v17 }
 0x6af   :  { %4883 = vmatpush3.xpose.msk.msra.mxu1 %vm106_vm0, %v863_v56 }
 0x6b0   :  { %4892 = vmatprep.subr.mxu1 %v5366_v17 }
 0x6b2   :  { %4885 = vmatmul.mubr.msk.f32.vlgmr.msra.gmra.mrb[10].mxu1 %vm106_vm0, %v861_v57 }
 0x6b3   :  { %4894 = vmatprep.mubr.msk.f32.mxu1 %vm5367_vm1, %v5366_v17 }
 0x77a   :  { %v691_v58 = vpop.f32.mrb[6].mxu1 }
 0x77b   :  { %v4871_v59 = vpop.f32.mrb[7].mxu1  ;;  %4879 = vmatprep.mubr.msk.f32.mxu0 %vm106_vm0, %v691_v58 }
 0x77c   :  { %v440_v59 = vld [vmem:[%s6121_s10 + $0x10] sm:$0xff] }
 0x77e   :  { %v767_v60 = vpop.f32.mrb[8].mxu1 }
 0x77f   :  { %v4876_v62 = vpop.f32.mrb[9].mxu1  ;;  %4880 = vmatmul.mubr.msk.f32.vlgmr.msra.gmra.mrb[4].mxu0 %vm106_vm0, %v767_v60 }
 0x780   :  { %4888 = vmatpush3.xpose.msk.msra.mxu0 %vm106_vm0, %v941_v61  ;;  %4889 = vmatprep.mubr.msk.f32.mxu0 %vm5367_vm1, %v5366_v17 }
 0x781   :  { %4897 = vmatprep.subr.mxu0 %v5366_v17 }
 0x783   :  { %4890 = vmatmul.mubr.msk.f32.vlgmr.msra.gmra.mrb[6].mxu0 %vm106_vm0, %v939_v63 }
 0x784   :  { %4899 = vmatprep.mubr.msk.f32.mxu0 %vm5367_vm1, %v5366_v17 }
 0x785   :  { %v934_v0 = vpop.f32.mrb[10].mxu1 }
 0x786   :  { %v935_v1 = vadd.f32 %v934_v0, %v5602_v28  ;;  %v4886_v2 = vpop.f32.mrb[11].mxu1 }
 0x788   :  { %v1016_v3 = vsel %vm106_vm0, %v935_v1, -inf }
 0x789   :  { %1017 = vmax.xlane.f32.xlu1 %v1016_v3 }
 0x79a   :  { %1275 = vrot.lane.b32.xlu1 %v5583_v24, %s5372_s30 }
 0x79e   :  { %1273 = vrot.lane.b32.xlu1 %v5583_v24, %s5373_s4 }
 0x7a2   :  { %1351 = vrot.lane.b32.xlu1 %v5581_v22, %s5373_s4 }
 0x816   :  { %v1018_v4 = vpop.xlane.xlu1 %1017 }
 0x817   :  { %v1022_v5 = vsub.f32 %v935_v1, %v1018_v4 }
 0x819   :  { %v1024_v7 = vmul.f32 1.442695, %v1022_v5 }
 0x81a   :  { %v1276_v20 = vpop.permute.xlu1 %1275 }
 0x81b   :  { %5259 = vpow2.f32 %v1024_v7 }
 0x81e   :  { %v1274_v25 = vpop.permute.xlu1 %1273 }
 0x822   :  { %v1352_v27 = vpop.permute.xlu1 %1351 }
 0x825   :  { %v5260_v8 = vpop.eup %5259 }
 0x826   :  { %v1028_v9 = vsel %vm106_vm0, %v5260_v8, 0.0 }
 0x827   :  { %1029 = vadd.xlane.f32.xlu0 %v1028_v9 }
 0x83d   :  { %1038 = vrot.lane.b32.xlu0 %v5583_v24, %s5374_s0 }
 0x841   :  { %1353 = vrot.lane.b32.xlu0 %v5581_v22, %s5372_s30 }
 0x856   :  { %v1012_v10 = vpop.f32.mrb[6].mxu0 }
 0x857   :  { %v4891_v12 = vpop.f32.mrb[7].mxu0  ;;  %v1013_v13 = vadd.f32 %v1012_v10, %v5605_v31 }
 0x859   :  { %v1019_v14 = vsel %vm106_vm0, %v1013_v13, -inf }
 0x860   :  { %1020 = vmax.xlane.f32.xlu0 %v1019_v14 }
 0x876   :  { %1114 = vrot.lane.b32.xlu0 %v5581_v22, %s5374_s0 }
 0x87a   :  { %1451 = vrot.lane.b32.xlu0 %v5583_v24, %s5375_s23 }
 0x87e   :  { %1688 = vrot.lane.b32.xlu0 %v5583_v24, %s6143_s1 }
 0x882   :  { %1766 = vrot.lane.b32.xlu0 %v5581_v22, %s6143_s1 }
 0x886   :  { %1686 = vrot.lane.b32.xlu0 %v5583_v24, %s6141_s5 }
 0x88a   :  { %1764 = vrot.lane.b32.xlu0 %v5581_v22, %s6141_s5 }
 0x8b4   :  { %v1030_v15 = vpop.xlane.xlu0 %1029 }
 0x8b5   :  { %5261 = vrcp.f32 %v1030_v15 }
 0x8b8   :  { %v1039_v18 = vpop.permute.xlu0 %1038 }
 0x8b9   :  { %4893 = vmatpush3.msra.mxu1 %v1039_v18 }
 0x8ba   :  { %4907 = vmatprep.subr.mxu1 %v5366_v17 }
 0x8bc   :  { %v1354_v26 = vpop.permute.xlu0 %1353 }
 0x8bf   :  { %v5262_v21 = vpop.eup %5261 }
 0x8c0   :  { %v1035_v23 = vmul.f32 %v5262_v21, %v5260_v8 }
 0x8c2   :  { %4895 = vmatmul.mubr.msk.f32.vlgmr.msra.gmra.mrb[12].mxu1 %vm106_vm0, %v1035_v23 }
 0x8c3   :  { %4908 = vmatpush3.xpose.msk.msra.mxu1 %vm106_vm0, %v1276_v20  ;;  %4909 = vmatprep.mubr.msk.f32.mxu1 %vm5367_vm1, %v5366_v17 }
 0x8c4   :  { %4912 = vmatprep.subr.mxu1 %v5366_v17 }
 0x8c6   :  { %4910 = vmatmul.mubr.msk.f32.vlgmr.msra.gmra.mrb[14].mxu1 %vm106_vm0, %v1274_v25 }
 0x8c7   :  { %4913 = vmatpush3.xpose.msk.msra.mxu1 %vm106_vm0, %v1354_v26  ;;  %4914 = vmatprep.mubr.msk.f32.mxu1 %vm5367_vm1, %v5366_v17 }
 0x8c8   :  { %4922 = vmatprep.subr.mxu1 %v5366_v17 }
 0x8ca   :  { %4915 = vmatmul.mubr.msk.f32.vlgmr.msra.gmra.mrb[16].mxu1 %vm106_vm0, %v1352_v27 }
 0x8cb   :  { %4924 = vmatprep.mubr.msk.f32.mxu1 %vm5367_vm1, %v5366_v17 }
 0x8ed   :  { %v1021_v29 = vpop.xlane.xlu0 %1020 }
 0x8ee   :  { %v1023_v30 = vsub.f32 %v1013_v13, %v1021_v29 }
 0x8f0   :  { %v1026_v32 = vmul.f32 1.442695, %v1023_v30 }
 0x8f1   :  { %v1115_v33 = vpop.permute.xlu0 %1114 }
 0x8f2   :  { %5263 = vpow2.f32 %v1026_v32  ;;  %4898 = vmatpush3.msra.mxu0 %v1115_v33 }
 0x8f3   :  { %4902 = vmatprep.subr.mxu0 %v439_v47 }
 0x8f5   :  { %v1452_v60 = vpop.permute.xlu0 %1451 }
 0x8f9   :  { %v1689_v1 = vpop.permute.xlu0 %1688 }
 0x8fc   :  { %v5264_v34 = vpop.eup %5263 }
 0x8fd   :  { %v1031_v35 = vsel %vm106_vm0, %v5264_v34, 0.0  ;;  %v1767_v5 = vpop.permute.xlu0 %1766 }
 0x8fe   :  { %1032 = vadd.xlane.f32.xlu1 %v1031_v35 }
 0x901   :  { %v1687_v8 = vpop.permute.xlu0 %1686 }
 0x905   :  { %v1765_v14 = vpop.permute.xlu0 %1764 }
 0x98b   :  { %v1033_v36 = vpop.xlane.xlu1 %1032 }
 0x98c   :  { %5265 = vrcp.f32 %v1033_v36 }
 0x995   :  { %v1110_v37 = vpop.f32.mrb[12].mxu1 }
 0x996   :  { %v5266_v38 = vpop.eup %5265  ;;  %v4896_v6 = vpop.f32.mrb[13].mxu1 }
 0x997   :  { %v1037_v11 = vmul.f32 %v5266_v38, %v5264_v34 }
 0x999   :  { %4900 = vmatmul.mubr.msk.f32.vlgmr.msra.gmra.mrb[8].mxu0 %vm106_vm0, %v1037_v11  ;;  %v1347_v39 = vpop.f32.mrb[14].mxu1 }
 0x99a   :  { %v1348_v40 = vadd.f32 %v1347_v39, %v5602_v28  ;;  %4904 = vmatprep.mubr.msk.f32.mxu0 %vm106_vm0, %v1110_v37  ;;  %v4911_v41 = vpop.f32.mrb[15].mxu1  ;;  %4903 = vmatpush3.msra.mxu0 %v439_v47 }
 0x99b   :  { %4917 = vmatprep.subr.mxu0 %v5366_v17 }
 0x99c   :  { %v1429_v42 = vsel %vm106_vm0, %v1348_v40, -inf }
 0x99d   :  { %1430 = vmax.xlane.f32.xlu1 %v1429_v42  ;;  %v1425_v43 = vpop.f32.mrb[16].mxu1  ;;  %v441_v42 = vld [vmem:[%s6121_s10 + $0x18] sm:$0xff] }
 0x99e   :  { %v1426_v44 = vadd.f32 %v1425_v43, %v5605_v31  ;;  %v4916_v45 = vpop.f32.mrb[17].mxu1 }
 0x9a0   :  { %v1432_v46 = vsel %vm106_vm0, %v1426_v44, -inf }
 0x9a1   :  { %1433 = vmax.xlane.f32.xlu1 %v1432_v46 }
 0xa2a   :  { %v1431_v48 = vpop.xlane.xlu1 %1430 }
 0xa2b   :  { %v1435_v49 = vsub.f32 %v1348_v40, %v1431_v48 }
 0xa2d   :  { %v1437_v50 = vmul.f32 1.442695, %v1435_v49  ;;  %v4584_v49 = vld [vmem:[%s6122_s11] ss:$0 sm:$0xff] }
 0xa2e   :  { %v1434_v51 = vpop.xlane.xlu1 %1433 }
 0xa2f   :  { %5267 = vpow2.f32 %v1437_v50  ;;  %v1436_v52 = vsub.f32 %v1426_v44, %v1434_v51 }
 0xa31   :  { %v1439_v53 = vmul.f32 1.442695, %v1436_v52 }
 0xa33   :  { %5269 = vpow2.f32 %v1439_v53 }
 0xa39   :  { %v5268_v54 = vpop.eup %5267 }
 0xa3a   :  { %v1441_v55 = vsel %vm106_vm0, %v5268_v54, 0.0 }
 0xa3b   :  { %1442 = vadd.xlane.f32.xlu1 %v1441_v55 }
 0xa3d   :  { %v5270_v56 = vpop.eup %5269 }
 0xa3e   :  { %v1444_v57 = vsel %vm106_vm0, %v5270_v56, 0.0 }
 0xa3f   :  { %1445 = vadd.xlane.f32.xlu1 %v1444_v57 }
 0xa50   :  { %1527 = vrot.lane.b32.xlu1 %v5581_v22, %s5375_s23 }
 0xa6c   :  { %v1186_v58 = vpop.f32.mrb[8].mxu0 }
 0xa6d   :  { %v4901_v61 = vpop.f32.mrb[9].mxu0  ;;  %4905 = vmatmul.mubr.msk.f32.vlgmr.msra.gmra.mrb[4].mxu0 %vm106_vm0, %v1186_v58 }
 0xa6e   :  { %4918 = vmatpush3.msra.mxu0 %v1452_v60  ;;  %4919 = vmatprep.mubr.msk.f32.mxu0 %vm5367_vm1, %v5366_v17 }
 0xa6f   :  { %4927 = vmatprep.subr.mxu0 %v440_v59 }
 0xac8   :  { %v1443_v62 = vpop.xlane.xlu1 %1442 }
 0xac9   :  { %5271 = vrcp.f32 %v1443_v62 }
 0xacc   :  { %v1446_v63 = vpop.xlane.xlu1 %1445 }
 0xacd   :  { %5273 = vrcp.f32 %v1446_v63 }
 0xad0   :  { %v1528_v0 = vpop.permute.xlu1 %1527 }
 0xad1   :  { %4923 = vmatpush3.msra.mxu1 %v1528_v0 }
 0xad2   :  { %4932 = vmatprep.subr.mxu1 %v5366_v17 }
 0xad3   :  { %v5272_v2 = vpop.eup %5271 }
 0xad4   :  { %v1448_v3 = vmul.f32 %v5272_v2, %v5268_v54 }
 0xad6   :  { %4920 = vmatmul.mubr.msk.f32.vlgmr.msra.gmra.mrb[10].mxu0 %vm106_vm0, %v1448_v3  ;;  %v2146_v3 = vld [vmem:[%s6125_s14 + $0x8] sm:$0xff] }
 0xad7   :  { %v5274_v4 = vpop.eup %5273  ;;  %4928 = vmatpush3.msra.mxu0 %v440_v59 }
 0xad8   :  { %v1450_v7 = vmul.f32 %v5274_v4, %v5270_v56  ;;  %4937 = vmatprep.subr.mxu0 %v5366_v17 }
 0xada   :  { %4925 = vmatmul.mubr.msk.f32.vlgmr.msra.gmra.mrb[18].mxu1 %vm106_vm0, %v1450_v7  ;;  %v2148_v7 = vld [vmem:[%s6125_s14 + $0x18] sm:$0xff] }
 0xadb   :  { %4933 = vmatpush3.xpose.msk.msra.mxu1 %vm106_vm0, %v1689_v1  ;;  %4934 = vmatprep.mubr.msk.f32.mxu1 %vm5367_vm1, %v5366_v17 }
 0xadc   :  { %4942 = vmatprep.subr.mxu1 %v5366_v17 }
 0xade   :  { %4935 = vmatmul.mubr.msk.f32.vlgmr.msra.gmra.mrb[20].mxu1 %vm106_vm0, %v1687_v8 }
 0xadf   :  { %4944 = vmatprep.mubr.msk.f32.mxu1 %vm5367_vm1, %v5366_v17 }
 0xba9   :  { %v1523_v9 = vpop.f32.mrb[10].mxu0 }
 0xbaa   :  { %v4921_v10 = vpop.f32.mrb[11].mxu0  ;;  %4929 = vmatprep.mubr.msk.f32.mxu0 %vm106_vm0, %v1523_v9 }
 0xbad   :  { %v1599_v12 = vpop.f32.mrb[18].mxu1 }
 0xbae   :  { %v4926_v13 = vpop.f32.mrb[19].mxu1  ;;  %4930 = vmatmul.mubr.msk.f32.vlgmr.msra.gmra.mrb[4].mxu0 %vm106_vm0, %v1599_v12 }
 0xbaf   :  { %4938 = vmatpush3.xpose.msk.msra.mxu0 %vm106_vm0, %v1767_v5  ;;  %4939 = vmatprep.mubr.msk.f32.mxu0 %vm5367_vm1, %v5366_v17  ;;  %v2147_v5 = vld [vmem:[%s6125_s14 + $0x10] sm:$0xff] }
 0xbb0   :  { %4947 = vmatprep.subr.mxu0 %v5366_v17  ;;  %v5151_v8 = vpack.c.bf16 %v2148_v7, %v2147_v5 }
 0xbb1   :  { %v1760_v15 = vpop.f32.mrb[20].mxu1 }
 0xbb2   :  { %v1761_v18 = vadd.f32 %v1760_v15, %v5602_v28  ;;  %v4936_v20 = vpop.f32.mrb[21].mxu1  ;;  %4940 = vmatmul.mubr.msk.f32.vlgmr.msra.gmra.mrb[12].mxu0 %vm106_vm0, %v1765_v14 }
 0xbb3   :  { %4949 = vmatprep.mubr.msk.f32.mxu0 %vm5367_vm1, %v5366_v17  ;;  %v4609_v20 = vld [vmem:[%s6123_s12] ss:$0 sm:$0xff] }
 0xbb4   :  { %v1842_v21 = vsel %vm106_vm0, %v1761_v18, -inf }
 0xbb5   :  { %1843 = vmax.xlane.f32.xlu1 %v1842_v21 }
 0xc42   :  { %v1844_v23 = vpop.xlane.xlu1 %1843 }
 0xc43   :  { %v1848_v25 = vsub.f32 %v1761_v18, %v1844_v23 }
 0xc45   :  { %v1850_v26 = vmul.f32 1.442695, %v1848_v25 }
 0xc47   :  { %5275 = vpow2.f32 %v1850_v26  ;;  %v4610_v26 = vld [vmem:[%s6124_s13] ss:$0 sm:$0xff] }
 0xc51   :  { %v5276_v33 = vpop.eup %5275 }
 0xc52   :  { %v1854_v34 = vsel %vm106_vm0, %v5276_v33, 0.0 }
 0xc85   :  { %v1838_v27 = vpop.f32.mrb[12].mxu0 }
 0xc86   :  { %v1839_v29 = vadd.f32 %v1838_v27, %v5605_v31  ;;  %v4941_v30 = vpop.f32.mrb[13].mxu0 }
 0xc88   :  { %v1845_v32 = vsel %vm106_vm0, %v1839_v29, -inf }
 0xc89   :  { %1846 = vmax.xlane.f32.xlu0 %v1845_v32 }
 0xc8d   :  { %1855 = vadd.xlane.f32.xlu0 %v1854_v34  ;;  %v2256_v34 = vld [vmem:[%s6127_s16 + $0x8] sm:$0xff] }
 0xca3   :  { %1864 = vrot.lane.b32.xlu0 %v5583_v24, %s6139_s28 }
 0xd16   :  { %v1847_v35 = vpop.xlane.xlu0 %1846 }
 0xd17   :  { %v1849_v36 = vsub.f32 %v1839_v29, %v1847_v35 }
 0xd19   :  { %v1852_v37 = vmul.f32 1.442695, %v1849_v36  ;;  %v2257_v36 = vld [vmem:[%s6127_s16 + $0x10] sm:$0xff] }
 0xd1a   :  { %v1856_v38 = vpop.xlane.xlu0 %1855 }
 0xd1b   :  { %5277 = vpow2.f32 %v1852_v37  ;;  %v2258_v37 = vld [vmem:[%s6127_s16 + $0x18] sm:$0xff] }
 0xd1c   :  { %5279 = vrcp.f32 %v1856_v38  ;;  %v5159_v38 = vpack.c.bf16 %v2258_v37, %v2257_v36 }
 0xd1e   :  { %v1865_v6 = vpop.permute.xlu0 %1864 }
 0xd1f   :  { %4943 = vmatpush3.msra.mxu1 %v1865_v6  ;;  %v2259_v6 = vld [vmem:[%s6127_s16 + $0x20] sm:$0xff] }
 0xd25   :  { %v5278_v11 = vpop.eup %5277 }
 0xd26   :  { %v5280_v39 = vpop.eup %5279  ;;  %v1857_v40 = vsel %vm106_vm0, %v5278_v11, 0.0 }
 0xd27   :  { %v1861_v41 = vmul.f32 %v5280_v39, %v5276_v33  ;;  %1858 = vadd.xlane.f32.xlu1 %v1857_v40  ;;  %v2255_v33 = vld [vmem:[%s6127_s16] sm:$0xff]  ;;  %v2261_v40 = vld [vmem:[%s6127_s16 + $0x30] sm:$0xff] }
 0xd28   :  { %v5155_v35 = vpack.c.bf16 %v2256_v34, %v2255_v33 }
 0xd29   :  { %4945 = vmatmul.mubr.msk.f32.vlgmr.msra.gmra.mrb[22].mxu1 %vm106_vm0, %v1861_v41  ;;  %v2262_v41 = vld [vmem:[%s6127_s16 + $0x38] sm:$0xff] }
 0xd38   :  { %1940 = vrot.lane.b32.xlu1 %v5581_v22, %s6139_s28 }
 0xdb4   :  { %v1859_v24 = vpop.xlane.xlu1 %1858 }
 0xdb5   :  { %5281 = vrcp.f32 %v1859_v24  ;;  %v5167_v24 = vpack.c.bf16 %v2262_v41, %v2261_v40  ;;  %v4618_v41 = vld [vmem:[%s6130_s19] ss:$0 sm:$0xff] }
 0xdb8   :  { %v1941_v43 = vpop.permute.xlu1 %1940 }
 0xdb9   :  { %4948 = vmatpush3.msra.mxu0 %v1941_v43 }
 0xdba   :  { %4952 = vmatprep.subr.mxu0 %v441_v42 }
 0xdbf   :  { %v5282_v44 = vpop.eup %5281 }
 0xdc0   :  { %v1863_v45 = vmul.f32 %v5282_v44, %v5278_v11  ;;  %v2260_v11 = vld [vmem:[%s6127_s16 + $0x28] sm:$0xff] }
 0xdc1   :  { %v5163_v39 = vpack.c.bf16 %v2260_v11, %v2259_v6  ;;  %v4617_v6 = vld [vmem:[%s6129_s18] ss:$0 sm:$0xff] }
 0xdc2   :  { %4950 = vmatmul.mubr.msk.f32.vlgmr.msra.gmra.mrb[14].mxu0 %vm106_vm0, %v1863_v45 }
 0xdc3   :  { %4953 = vmatpush3.msra.mxu0 %v441_v42  ;;  %v4611_v42 = vld [vmem:[%s6126_s15] ss:$0 sm:$0xff] }
 0xdc4   :  { %5156 = vmatprep.subr.bf16.mxu0 %v5155_v35 }
 0xdfc   :  { %v1936_v46 = vpop.f32.mrb[22].mxu1 }
 0xdfd   :  { %v4946_v47 = vpop.f32.mrb[23].mxu1  ;;  %4954 = vmatprep.mubr.msk.f32.mxu0 %vm106_vm0, %v1936_v46 }
 0xe95   :  { %v2012_v48 = vpop.f32.mrb[14].mxu0 }
 0xe96   :  { %v4951_v22 = vpop.f32.mrb[15].mxu0  ;;  %4955 = vmatmul.mubr.msk.f32.vlgmr.msra.gmra.mrb[4].mxu0 %vm106_vm0, %v2012_v48 }
 0xe97   :  { %5158 = vmatpush3.bf16.msra.mxu0 %v5155_v35 }
 0xe98   :  { %5160 = vmatprep.subr.bf16.mxu0 %v5159_v38 }
 0xe9b   :  { %5162 = vmatpush3.bf16.msra.mxu0 %v5159_v38 }
 0xe9c   :  { %5164 = vmatprep.subr.bf16.mxu0 %v5163_v39 }
 0xe9f   :  { %5166 = vmatpush3.bf16.msra.mxu0 %v5163_v39 }
 0xea0   :  { %5168 = vmatprep.subr.bf16.mxu0 %v5167_v24 }
 0xea3   :  { %5170 = vmatpush3.bf16.msra.mxu0 %v5167_v24 }
 0xea4   :  { %5008 = vmatprep.subr.mxu0 %v5366_v17 }
 0xf69   :  { %v4956_v50 = vpop.f32.mrb[4].mxu0 }
 0xf6a   :  { %v5209_v51 = vadd.f32 %v4956_v50, %v4584_v49  ;;  %v2088_v52 = vpop.f32.mrb[5].mxu0 }
 0xf6b   :  { %v5210_v53 = vadd.f32 %v4584_v49, %v2088_v52 }
 0xf6c   :  { %v2100_v54 = vadd.f32 %v5209_v51, %v5574_v19 }
 0xf6d   :  { %v2099_v55 = vadd.f32 %v5210_v53, %v5570_v16  ;;  %v2145_v16 = vld [vmem:[%s6125_s14] sm:$0xff] }
 0xf6e   :  { %v2106_v56 = vsel %vm298_vm2, %v2100_v54, 0.0  ;;  %v5147_v4 = vpack.c.bf16 %v2146_v3, %v2145_v16 }
 0xf6f   :  { %2107 = vadd.xlane.f32.xlu0 %v2106_v56  ;;  %v2103_v57 = vsel %vm298_vm2, %v2099_v55, 0.0 }
 0xf70   :  { %2104 = vadd.xlane.f32.xlu1 %v2103_v57  ;;  %5148 = vmatprep.subr.bf16.mxu1 %v5147_v4 }
 0xf71   :  { %5150 = vmatpush3.bf16.msra.mxu1 %v5147_v4 }
 0xf72   :  { %5152 = vmatprep.subr.bf16.mxu1 %v5151_v8 }
 0xf75   :  { %5154 = vmatpush3.bf16.msra.mxu1 %v5151_v8 }
 0xffc   :  { %v2108_v58 = vpop.xlane.xlu0 %2107 }
 0xffd   :  { %v2110_v59 = vmul.f32 0.03125, %v2108_v58  ;;  %v2105_v60 = vpop.xlane.xlu1 %2104 }
 0xffe   :  { %v2109_v61 = vmul.f32 0.03125, %v2105_v60 }
 0xfff   :  { %v2112_v62 = vsub.f32 %v2100_v54, %v2110_v59 }
0x1000   :  { %v2111_v63 = vsub.f32 %v2099_v55, %v2109_v61 }
0x1001   :  { %v2114_v0 = vmul.f32 %v2112_v62, %v2112_v62 }
0x1002   :  { %v2113_v1 = vmul.f32 %v2111_v63, %v2111_v63 }
0x1003   :  { %v2118_v2 = vsel %vm298_vm2, %v2114_v0, 0.0  ;;  %v4614_v0 = vld [vmem:[%s6128_s17] ss:$0 sm:$0xff] }
0x1004   :  { %2119 = vadd.xlane.f32.xlu1 %v2118_v2  ;;  %v2115_v19 = vsel %vm298_vm2, %v2113_v1, 0.0 }
0x1005   :  { %2116 = vadd.xlane.f32.xlu0 %v2115_v19 }
0x1091   :  { %v2120_v9 = vpop.xlane.xlu1 %2119 }
0x1092   :  { %v2122_v10 = vmul.f32 0.03125, %v2120_v9  ;;  %v2117_v12 = vpop.xlane.xlu0 %2116 }
0x1093   :  { %v2121_v13 = vmul.f32 0.03125, %v2117_v12 }
0x1094   :  { %v2124_v14 = vadd.f32 1e-05, %v2122_v10 }
0x1095   :  { %v2123_v15 = vadd.f32 1e-05, %v2121_v13 }
0x1096   :  { %5283 = vrsqrt.f32 %v2124_v14 }
0x1097   :  { %5285 = vrsqrt.f32 %v2123_v15 }
0x10a0   :  { %v5284_v18 = vpop.eup %5283 }
0x10a1   :  { %v5286_v21 = vpop.eup %5285  ;;  %v2128_v23 = vmul.f32 %v5284_v18, %v2112_v62 }
0x10a2   :  { %v2127_v25 = vmul.f32 %v5286_v21, %v2111_v63 }
0x10a3   :  { %v2136_v27 = vmul.f32 %v4609_v20, %v2128_v23  ;;  %v4619_v23 = vld [vmem:[%s6119_s8 + $0x20] sm:$0xff] }
0x10a4   :  { %v2135_v29 = vmul.f32 %v4609_v20, %v2127_v25  ;;  %v4620_v25 = vld [vmem:[%s6119_s8 + $0x28] sm:$0xff] }
0x10a5   :  { %v2144_v32 = vadd.f32 %v4610_v26, %v2136_v27  ;;  %v4621_v27 = vld [vmem:[%s6119_s8 + $0x30] sm:$0xff] }
0x10a6   :  { %v2143_v30 = vadd.f32 %v4610_v26, %v2135_v29  ;;  %v5171_v26 = vpack.c.bf16 %v4620_v25, %v4619_v23  ;;  %v4622_v29 = vld [vmem:[%s6119_s8 + $0x38] sm:$0xff] }
0x10a8   :  { %4965 = vmatprep.mubr.msk.f32.mxu1 %vm298_vm2, %v2143_v30  ;;  %5172 = vmatprep.subr.bf16.mxu1 %v5171_v26 }
0x10a9   :  { %4966 = vmatmul.mubr.msk.f32.vlgmr.msra.gmra.mrb[24].mxu1 %vm298_vm2, %v2144_v32 }
0x10aa   :  { %5174 = vmatpush3.bf16.msra.mxu1 %v5171_v26 }
0x117c   :  { %v4967_v43 = vpop.f32.mrb[24].mxu1 }
0x117d   :  { %v2234_v44 = vadd.f32 %v4967_v43, %v4611_v42  ;;  %v2228_v45 = vpop.f32.mrb[25].mxu1 }
0x117e   :  { %v2229_v46 = vadd.f32 %v4611_v42, %v2228_v45  ;;  %v4624_v45 = vld [vmem:[%s6120_s9 + $0x1] ss:$0 sm:$0xff] }
0x117f   :  { %v2238_v47 = vmul.f32 %v2234_v44, %v2234_v44 }
0x1180   :  { %v2237_v48 = vmul.f32 %v2229_v46, %v2229_v46 }
0x1181   :  { %v2240_v22 = vmul.f32 %v2238_v47, %v2234_v44 }
0x1182   :  { %v2239_v49 = vmul.f32 %v2237_v48, %v2229_v46 }
0x1183   :  { %v2242_v50 = vmul.f32 0.044715, %v2240_v22 }
0x1184   :  { %v2241_v51 = vmul.f32 0.044715, %v2239_v49 }
0x1185   :  { %v2244_v52 = vadd.f32 %v2242_v50, %v2234_v44 }
0x1186   :  { %v2243_v53 = vadd.f32 %v2241_v51, %v2229_v46 }
0x1187   :  { %v2246_v54 = vmul.f32 0.7978846, %v2244_v52 }
0x1188   :  { %v2245_v55 = vmul.f32 0.7978846, %v2243_v53 }
0x1189   :  { %5287 = vtanh.f32 %v2246_v54 }
0x118a   :  { %5289 = vtanh.f32 %v2245_v55 }
0x1193   :  { %v5288_v56 = vpop.eup %5287 }
0x1194   :  { %v5290_v57 = vpop.eup %5289  ;;  %v2250_v58 = vadd.f32 1.0, %v5288_v56 }
0x1195   :  { %v2249_v59 = vadd.f32 1.0, %v5290_v57 }
0x1196   :  { %v2252_v60 = vmul.f32 0.5, %v2250_v58 }
0x1197   :  { %v2251_v61 = vmul.f32 0.5, %v2249_v59 }
0x1198   :  { %v2254_v63 = vmul.f32 %v2252_v60, %v2234_v44 }
0x1199   :  { %v2253_v62 = vmul.f32 %v2251_v61, %v2229_v46 }
0x119b   :  { %4984 = vmatprep.mubr.msk.f32.mxu0 %vm2270_vm3, %v2253_v62 }
0x119c   :  { %4985 = vmatmul.mubr.msk.f32.vlgmr.msra.gmra.mrb[16].mxu0 %vm2270_vm3, %v2254_v63 }
0x119d   :  { %5010 = vmatprep.mubr.msk.f32.mxu0 %vm5367_vm1, %v5366_v17 }
0x126f   :  { %v4986_v1 = vpop.f32.mrb[16].mxu0 }
0x1270   :  { %v2349_v2 = vadd.f32 %v4986_v1, %v4614_v0  ;;  %v2343_v19 = vpop.f32.mrb[17].mxu0 }
0x1271   :  { %v2344_v16 = vadd.f32 %v4614_v0, %v2343_v19 }
0x1272   :  { %v2353_v3 = vadd.f32 %v2349_v2, %v2144_v32 }
0x1273   :  { %v2352_v4 = vadd.f32 %v2344_v16, %v2143_v30  ;;  %v5175_v30 = vpack.c.bf16 %v4622_v29, %v4621_v27 }
0x1274   :  { %v2359_v5 = vsel %vm298_vm2, %v2353_v3, 0.0 }
0x1275   :  { %2360 = vadd.xlane.f32.xlu1 %v2359_v5  ;;  %v2356_v7 = vsel %vm298_vm2, %v2352_v4, 0.0  ;;  %5176 = vmatprep.subr.bf16.mxu1 %v5175_v30 }
0x1276   :  { %2357 = vadd.xlane.f32.xlu0 %v2356_v7  ;;  %5178 = vmatpush3.bf16.msra.mxu1 %v5175_v30 }
0x1277   :  { %4998 = vmatprep.subr.mxu1 %v5366_v17 }
0x1302   :  { %v2361_v8 = vpop.xlane.xlu1 %2360 }
0x1303   :  { %v2363_v9 = vmul.f32 0.03125, %v2361_v8  ;;  %v2358_v10 = vpop.xlane.xlu0 %2357 }
0x1304   :  { %v2362_v12 = vmul.f32 0.03125, %v2358_v10 }
0x1305   :  { %v2365_v13 = vsub.f32 %v2353_v3, %v2363_v9 }
0x1306   :  { %v2364_v14 = vsub.f32 %v2352_v4, %v2362_v12  ;;  %v4627_v4 = vld [vmem:[%s6121_s10 + $0x20] sm:$0xff] }
0x1307   :  { %v2367_v15 = vmul.f32 %v2365_v13, %v2365_v13 }
0x1308   :  { %v2366_v18 = vmul.f32 %v2364_v14, %v2364_v14 }
0x1309   :  { %v2371_v20 = vsel %vm298_vm2, %v2367_v15, 0.0 }
0x130a   :  { %2372 = vadd.xlane.f32.xlu1 %v2371_v20  ;;  %v2368_v21 = vsel %vm298_vm2, %v2366_v18, 0.0 }
0x130b   :  { %2369 = vadd.xlane.f32.xlu0 %v2368_v21 }
0x1397   :  { %v2373_v32 = vpop.xlane.xlu1 %2372 }
0x1398   :  { %v2375_v33 = vmul.f32 0.03125, %v2373_v32  ;;  %v2370_v34 = vpop.xlane.xlu0 %2369 }
0x1399   :  { %v2374_v35 = vmul.f32 0.03125, %v2370_v34 }
0x139a   :  { %v2377_v36 = vadd.f32 1e-05, %v2375_v33 }
0x139b   :  { %v2376_v37 = vadd.f32 1e-05, %v2374_v35 }
0x139c   :  { %5291 = vrsqrt.f32 %v2377_v36 }
0x139d   :  { %5293 = vrsqrt.f32 %v2376_v37 }
0x13a6   :  { %v5292_v38 = vpop.eup %5291 }
0x13a7   :  { %v5294_v11 = vpop.eup %5293  ;;  %v2381_v39 = vmul.f32 %v5292_v38, %v2365_v13 }
0x13a8   :  { %v2380_v40 = vmul.f32 %v5294_v11, %v2364_v14 }
0x13a9   :  { %v2389_v24 = vmul.f32 %v4617_v6, %v2381_v39 }
0x13aa   :  { %v2388_v42 = vmul.f32 %v4617_v6, %v2380_v40 }
0x13ab   :  { %v5839_v44 = vadd.f32 %v4618_v41, %v2389_v24 }
0x13ac   :  { %v5837_v43 = vadd.f32 %v4618_v41, %v2388_v42 }
0x13ae   :  { %4995 = vmatprep.mubr.msk.f32.mxu1 %vm298_vm2, %v5837_v43 }
0x13af   :  { %4996 = vmatmul.mubr.msk.f32.vlgmr.msra.gmra.mrb[26].mxu1 %vm298_vm2, %v5839_v44 }
0x13b0   :  { %5000 = vmatprep.mubr.msk.f32.mxu1 %vm5367_vm1, %v5366_v17 }
0x1482   :  { %v4997_v46 = vpop.f32.mrb[26].mxu1 }
0x1483   :  { %v5850_v47 = vadd.f32 %v4997_v46, %v4624_v45  ;;  %v2483_v48 = vpop.f32.mrb[27].mxu1 }
0x1484   :  { %v5852_v22 = vadd.f32 %v4624_v45, %v2483_v48 }
0x1485   :  { %2577 = vrot.lane.b32.xlu1 %v5850_v47, %s5368_s7 }
0x1486   :  { %2500 = vrot.lane.b32.xlu0 %v5852_v22, %s5368_s7 }
0x14f7   :  { %v2578_v50 = vpop.permute.xlu1 %2577 }
0x14f8   :  { %v2501_v49 = vpop.permute.xlu0 %2500 }
0x14f9   :  { %4999 = vmatpush3.xpose.msk.msra.mxu1 %vm106_vm0, %v2501_v49 }
0x14fa   :  { %5003 = vmatprep.subr.mxu1 %v5366_v17 }
0x14fc   :  { %5001 = vmatmul.mubr.msk.f32.vlgmr.msra.gmra.mrb[28].mxu1 %vm106_vm0, %v5852_v22 }
0x14fd   :  { %5004 = vmatpush3.xpose.msk.msra.mxu1 %vm106_vm0, %v2578_v50  ;;  %5005 = vmatprep.mubr.msk.f32.mxu1 %vm5367_vm1, %v5366_v17 }
0x14fe   :  { %5013 = vmatprep.subr.mxu1 %v5366_v17 }
0x1500   :  { %5006 = vmatmul.mubr.msk.f32.vlgmr.msra.gmra.mrb[30].mxu1 %vm106_vm0, %v5850_v47 }
0x1501   :  { %5015 = vmatprep.mubr.msk.f32.mxu1 %vm5367_vm1, %v5366_v17 }
0x15cf   :  { %v2572_v51 = vpop.f32.mrb[28].mxu1 }
0x15d0   :  { %v2573_v52 = vadd.f32 %v2572_v51, %v5602_v28  ;;  %v5002_v53 = vpop.f32.mrb[29].mxu1 }
0x15d2   :  { %v2653_v54 = vsel %vm106_vm0, %v2573_v52, -inf }
0x15d3   :  { %2654 = vmax.xlane.f32.xlu1 %v2653_v54  ;;  %v2649_v55 = vpop.f32.mrb[30].mxu1 }
0x15d4   :  { %v2650_v56 = vadd.f32 %v2649_v55, %v5605_v31  ;;  %v5007_v57 = vpop.f32.mrb[31].mxu1 }
0x15d6   :  { %v2656_v58 = vsel %vm106_vm0, %v2650_v56, -inf }
0x15d7   :  { %2657 = vmax.xlane.f32.xlu0 %v2656_v58 }
0x1660   :  { %v2655_v59 = vpop.xlane.xlu1 %2654 }
0x1661   :  { %v2659_v60 = vsub.f32 %v2573_v52, %v2655_v59 }
0x1663   :  { %v2661_v61 = vmul.f32 1.442695, %v2659_v60 }
0x1664   :  { %v2658_v62 = vpop.xlane.xlu0 %2657 }
0x1665   :  { %5295 = vpow2.f32 %v2661_v61  ;;  %v2660_v63 = vsub.f32 %v2650_v56, %v2658_v62 }
0x1667   :  { %v2663_v0 = vmul.f32 1.442695, %v2660_v63 }
0x1669   :  { %5297 = vpow2.f32 %v2663_v0 }
0x166f   :  { %v5296_v1 = vpop.eup %5295 }
0x1670   :  { %v2665_v2 = vsel %vm106_vm0, %v5296_v1, 0.0 }
0x1671   :  { %2666 = vadd.xlane.f32.xlu0 %v2665_v2 }
0x1673   :  { %v5298_v19 = vpop.eup %5297 }
0x1674   :  { %v2668_v16 = vsel %vm106_vm0, %v5298_v19, 0.0 }
0x1675   :  { %2669 = vadd.xlane.f32.xlu1 %v2668_v16 }
0x1686   :  { %2751 = vrot.lane.b32.xlu1 %v5850_v47, %s5369_s2 }
0x1687   :  { %2675 = vrot.lane.b32.xlu0 %v5852_v22, %s5369_s2  ;;  %s6159_s2 = smov 72  }
0x168a   :  { %2918 = vrot.lane.b32.xlu1 %v5852_v22, %s5370_s27 }
0x168b   :  { %2916 = vrot.lane.b32.xlu0 %v5852_v22, %s5371_s3 }
0x168e   :  { %2996 = vrot.lane.b32.xlu1 %v5850_v47, %s5370_s27  ;;  %s6160_s27 = smov 104  }
0x168f   :  { %2994 = vrot.lane.b32.xlu0 %v5850_v47, %s5371_s3 }
0x16fe   :  { %v2667_v3 = vpop.xlane.xlu0 %2666 }
0x16ff   :  { %5299 = vrcp.f32 %v2667_v3  ;;  %v4628_v3 = vld [vmem:[%s6121_s10 + $0x28] sm:$0xff] }
0x1702   :  { %v2670_v5 = vpop.xlane.xlu1 %2669  ;;  %v2676_v7 = vpop.permute.xlu0 %2675 }
0x1703   :  { %5301 = vrcp.f32 %v2670_v5  ;;  %5009 = vmatpush3.msra.mxu0 %v2676_v7 }
0x1704   :  { %5018 = vmatprep.subr.mxu0 %v4627_v4 }
0x1706   :  { %v2752_v8 = vpop.permute.xlu1 %2751  ;;  %v2917_v15 = vpop.permute.xlu0 %2916 }
0x1707   :  { %5014 = vmatpush3.msra.mxu1 %v2752_v8 }
0x1708   :  { %5023 = vmatprep.subr.mxu1 %v5366_v17 }
0x1709   :  { %v5300_v9 = vpop.eup %5299 }
0x170a   :  { %v2672_v10 = vmul.f32 %v5300_v9, %v5296_v1  ;;  %v2919_v14 = vpop.permute.xlu1 %2918  ;;  %v2995_v26 = vpop.permute.xlu0 %2994 }
0x170c   :  { %5011 = vmatmul.mubr.msk.f32.vlgmr.msra.gmra.mrb[18].mxu0 %vm106_vm0, %v2672_v10 }
0x170d   :  { %v5302_v12 = vpop.eup %5301  ;;  %5019 = vmatpush3.msra.mxu0 %v4627_v4 }
0x170e   :  { %v2674_v13 = vmul.f32 %v5302_v12, %v5298_v19  ;;  %5028 = vmatprep.subr.mxu0 %v5366_v17  ;;  %v2997_v23 = vpop.permute.xlu1 %2996 }
0x1710   :  { %5016 = vmatmul.mubr.msk.f32.vlgmr.msra.gmra.mrb[32].mxu1 %vm106_vm0, %v2674_v13 }
0x1711   :  { %5024 = vmatpush3.xpose.msk.msra.mxu1 %vm106_vm0, %v2919_v14  ;;  %5025 = vmatprep.mubr.msk.f32.mxu1 %vm5367_vm1, %v5366_v17 }
0x1712   :  { %5033 = vmatprep.subr.mxu1 %v5366_v17 }
0x1714   :  { %5026 = vmatmul.mubr.msk.f32.vlgmr.msra.gmra.mrb[34].mxu1 %vm106_vm0, %v2917_v15 }
0x1715   :  { %5035 = vmatprep.mubr.msk.f32.mxu1 %vm5367_vm1, %v5366_v17 }
0x17df   :  { %v2747_v18 = vpop.f32.mrb[18].mxu0 }
0x17e0   :  { %v5012_v20 = vpop.f32.mrb[19].mxu0  ;;  %5020 = vmatprep.mubr.msk.f32.mxu0 %vm106_vm0, %v2747_v18 }
0x17e1   :  { %v4629_v20 = vld [vmem:[%s6121_s10 + $0x30] sm:$0xff] }
0x17e3   :  { %v2823_v21 = vpop.f32.mrb[32].mxu1 }
0x17e4   :  { %v5017_v25 = vpop.f32.mrb[33].mxu1  ;;  %5021 = vmatmul.mubr.msk.f32.vlgmr.msra.gmra.mrb[20].mxu0 %vm106_vm0, %v2823_v21 }
0x17e5   :  { %5029 = vmatpush3.xpose.msk.msra.mxu0 %vm106_vm0, %v2997_v23  ;;  %5030 = vmatprep.mubr.msk.f32.mxu0 %vm5367_vm1, %v5366_v17 }
0x17e6   :  { %5038 = vmatprep.subr.mxu0 %v5366_v17 }
0x17e7   :  { %v2990_v27 = vpop.f32.mrb[34].mxu1 }
0x17e8   :  { %v2991_v29 = vadd.f32 %v2990_v27, %v5602_v28  ;;  %v5027_v30 = vpop.f32.mrb[35].mxu1  ;;  %5031 = vmatmul.mubr.msk.f32.vlgmr.msra.gmra.mrb[22].mxu0 %vm106_vm0, %v2995_v26 }
0x17e9   :  { %5040 = vmatprep.mubr.msk.f32.mxu0 %vm5367_vm1, %v5366_v17 }
0x17ea   :  { %v3072_v32 = vsel %vm106_vm0, %v2991_v29, -inf }
0x17eb   :  { %3073 = vmax.xlane.f32.xlu1 %v3072_v32 }
0x17fc   :  { %3331 = vrot.lane.b32.xlu1 %v5852_v22, %s5372_s30 }
0x1800   :  { %3329 = vrot.lane.b32.xlu1 %v5852_v22, %s5373_s4 }
0x1804   :  { %3407 = vrot.lane.b32.xlu1 %v5850_v47, %s5373_s4 }
0x1878   :  { %v3074_v33 = vpop.xlane.xlu1 %3073 }
0x1879   :  { %v3078_v34 = vsub.f32 %v2991_v29, %v3074_v33 }
0x187b   :  { %v3080_v35 = vmul.f32 1.442695, %v3078_v34 }
0x187c   :  { %v3332_v24 = vpop.permute.xlu1 %3331 }
0x187d   :  { %5303 = vpow2.f32 %v3080_v35 }
0x1880   :  { %v3330_v46 = vpop.permute.xlu1 %3329 }
0x1884   :  { %v3408_v49 = vpop.permute.xlu1 %3407 }
0x1887   :  { %v5304_v36 = vpop.eup %5303 }
0x1888   :  { %v3084_v37 = vsel %vm106_vm0, %v5304_v36, 0.0 }
0x1889   :  { %3085 = vadd.xlane.f32.xlu0 %v3084_v37 }
0x189f   :  { %3094 = vrot.lane.b32.xlu0 %v5852_v22, %s5374_s0 }
0x18a3   :  { %3409 = vrot.lane.b32.xlu0 %v5850_v47, %s5372_s30 }
0x18bb   :  { %v3068_v38 = vpop.f32.mrb[22].mxu0 }
0x18bc   :  { %v5032_v6 = vpop.f32.mrb[23].mxu0  ;;  %v3069_v11 = vadd.f32 %v3068_v38, %v5605_v31 }
0x18be   :  { %v3075_v39 = vsel %vm106_vm0, %v3069_v11, -inf }
0x18c2   :  { %3076 = vmax.xlane.f32.xlu0 %v3075_v39 }
0x18d8   :  { %3170 = vrot.lane.b32.xlu0 %v5850_v47, %s5374_s0 }
0x18dc   :  { %3507 = vrot.lane.b32.xlu0 %v5852_v22, %s5375_s23 }
0x18e0   :  { %3744 = vrot.lane.b32.xlu0 %v5852_v22, %s6159_s2 }
0x18e4   :  { %3822 = vrot.lane.b32.xlu0 %v5850_v47, %s6159_s2 }
0x18e8   :  { %3742 = vrot.lane.b32.xlu0 %v5852_v22, %s6160_s27 }
0x18ec   :  { %3820 = vrot.lane.b32.xlu0 %v5850_v47, %s6160_s27 }
0x1916   :  { %v3086_v40 = vpop.xlane.xlu0 %3085 }
0x1917   :  { %5305 = vrcp.f32 %v3086_v40 }
0x191a   :  { %v3095_v41 = vpop.permute.xlu0 %3094 }
0x191b   :  { %5034 = vmatpush3.msra.mxu1 %v3095_v41 }
0x191c   :  { %5048 = vmatprep.subr.mxu1 %v5366_v17 }
0x191e   :  { %v3410_v48 = vpop.permute.xlu0 %3409 }
0x1921   :  { %v5306_v42 = vpop.eup %5305 }
0x1922   :  { %v3091_v45 = vmul.f32 %v5306_v42, %v5304_v36 }
0x1924   :  { %5036 = vmatmul.mubr.msk.f32.vlgmr.msra.gmra.mrb[36].mxu1 %vm106_vm0, %v3091_v45 }
0x1925   :  { %5049 = vmatpush3.xpose.msk.msra.mxu1 %vm106_vm0, %v3332_v24  ;;  %5050 = vmatprep.mubr.msk.f32.mxu1 %vm5367_vm1, %v5366_v17 }
0x1926   :  { %5053 = vmatprep.subr.mxu1 %v5366_v17 }
0x1928   :  { %5051 = vmatmul.mubr.msk.f32.vlgmr.msra.gmra.mrb[38].mxu1 %vm106_vm0, %v3330_v46 }
0x1929   :  { %5054 = vmatpush3.xpose.msk.msra.mxu1 %vm106_vm0, %v3410_v48  ;;  %5055 = vmatprep.mubr.msk.f32.mxu1 %vm5367_vm1, %v5366_v17 }
0x192a   :  { %5063 = vmatprep.subr.mxu1 %v5366_v17 }
0x192c   :  { %5056 = vmatmul.mubr.msk.f32.vlgmr.msra.gmra.mrb[40].mxu1 %vm106_vm0, %v3408_v49 }
0x192d   :  { %5065 = vmatprep.mubr.msk.f32.mxu1 %vm5367_vm1, %v5366_v17 }
0x194f   :  { %v3077_v50 = vpop.xlane.xlu0 %3076 }
0x1950   :  { %v3079_v51 = vsub.f32 %v3069_v11, %v3077_v50 }
0x1952   :  { %v3082_v52 = vmul.f32 1.442695, %v3079_v51 }
0x1953   :  { %v3171_v53 = vpop.permute.xlu0 %3170 }
0x1954   :  { %5307 = vpow2.f32 %v3082_v52  ;;  %5039 = vmatpush3.msra.mxu0 %v3171_v53 }
0x1955   :  { %5043 = vmatprep.subr.mxu0 %v4628_v3 }
0x1957   :  { %v3508_v21 = vpop.permute.xlu0 %3507 }
0x195b   :  { %v3745_v29 = vpop.permute.xlu0 %3744 }
0x195e   :  { %v5308_v54 = vpop.eup %5307 }
0x195f   :  { %v3087_v55 = vsel %vm106_vm0, %v5308_v54, 0.0  ;;  %v3823_v34 = vpop.permute.xlu0 %3822 }
0x1960   :  { %3088 = vadd.xlane.f32.xlu1 %v3087_v55 }
0x1963   :  { %v3743_v36 = vpop.permute.xlu0 %3742 }
0x1967   :  { %v3821_v39 = vpop.permute.xlu0 %3820 }
0x19ed   :  { %v3089_v56 = vpop.xlane.xlu1 %3088 }
0x19ee   :  { %5309 = vrcp.f32 %v3089_v56 }
0x19f7   :  { %v3166_v57 = vpop.f32.mrb[36].mxu1 }
0x19f8   :  { %v5310_v58 = vpop.eup %5309  ;;  %v5037_v59 = vpop.f32.mrb[37].mxu1 }
0x19f9   :  { %v3093_v60 = vmul.f32 %v5310_v58, %v5308_v54 }
0x19fb   :  { %5041 = vmatmul.mubr.msk.f32.vlgmr.msra.gmra.mrb[24].mxu0 %vm106_vm0, %v3093_v60  ;;  %v3403_v61 = vpop.f32.mrb[38].mxu1 }
0x19fc   :  { %v3404_v62 = vadd.f32 %v3403_v61, %v5602_v28  ;;  %5045 = vmatprep.mubr.msk.f32.mxu0 %vm106_vm0, %v3166_v57  ;;  %v5052_v63 = vpop.f32.mrb[39].mxu1  ;;  %5044 = vmatpush3.msra.mxu0 %v4628_v3  ;;  %v4640_v3 = vld [vmem:[%s6122_s11 + $0x1] ss:$0 sm:$0xff] }
0x19fd   :  { %5058 = vmatprep.subr.mxu0 %v5366_v17 }
0x19fe   :  { %v3485_v0 = vsel %vm106_vm0, %v3404_v62, -inf }
0x19ff   :  { %3486 = vmax.xlane.f32.xlu1 %v3485_v0  ;;  %v3481_v1 = vpop.f32.mrb[40].mxu1 }
0x1a00   :  { %v3482_v2 = vadd.f32 %v3481_v1, %v5605_v31  ;;  %v5057_v19 = vpop.f32.mrb[41].mxu1 }
0x1a02   :  { %v3488_v16 = vsel %vm106_vm0, %v3482_v2, -inf }
0x1a03   :  { %3489 = vmax.xlane.f32.xlu1 %v3488_v16 }
0x1a8c   :  { %v3487_v4 = vpop.xlane.xlu1 %3486 }
0x1a8d   :  { %v3491_v5 = vsub.f32 %v3404_v62, %v3487_v4  ;;  %v4630_v62 = vld [vmem:[%s6121_s10 + $0x38] sm:$0xff] }
0x1a8f   :  { %v3493_v7 = vmul.f32 1.442695, %v3491_v5 }
0x1a90   :  { %v3490_v8 = vpop.xlane.xlu1 %3489 }
0x1a91   :  { %5311 = vpow2.f32 %v3493_v7  ;;  %v3492_v9 = vsub.f32 %v3482_v2, %v3490_v8 }
0x1a93   :  { %v3495_v10 = vmul.f32 1.442695, %v3492_v9 }
0x1a95   :  { %5313 = vpow2.f32 %v3495_v10 }
0x1a9b   :  { %v5312_v12 = vpop.eup %5311 }
0x1a9c   :  { %v3497_v13 = vsel %vm106_vm0, %v5312_v12, 0.0 }
0x1a9d   :  { %3498 = vadd.xlane.f32.xlu1 %v3497_v13 }
0x1a9f   :  { %v5314_v14 = vpop.eup %5313 }
0x1aa0   :  { %v3500_v15 = vsel %vm106_vm0, %v5314_v14, 0.0 }
0x1aa1   :  { %3501 = vadd.xlane.f32.xlu1 %v3500_v15 }
0x1ab2   :  { %3583 = vrot.lane.b32.xlu1 %v5850_v47, %s5375_s23  ;;  %s6161_s23 = smov 40  }
0x1ace   :  { %v3242_v18 = vpop.f32.mrb[24].mxu0 }
0x1acf   :  { %v5042_v23 = vpop.f32.mrb[25].mxu0  ;;  %5046 = vmatmul.mubr.msk.f32.vlgmr.msra.gmra.mrb[20].mxu0 %vm106_vm0, %v3242_v18 }
0x1ad0   :  { %5059 = vmatpush3.msra.mxu0 %v3508_v21  ;;  %5060 = vmatprep.mubr.msk.f32.mxu0 %vm5367_vm1, %v5366_v17 }
0x1ad1   :  { %5068 = vmatprep.subr.mxu0 %v4629_v20 }
0x1b2a   :  { %v3499_v25 = vpop.xlane.xlu1 %3498 }
0x1b2b   :  { %5315 = vrcp.f32 %v3499_v25 }
0x1b2e   :  { %v3502_v26 = vpop.xlane.xlu1 %3501 }
0x1b2f   :  { %5317 = vrcp.f32 %v3502_v26 }
0x1b32   :  { %v3584_v27 = vpop.permute.xlu1 %3583 }
0x1b33   :  { %5064 = vmatpush3.msra.mxu1 %v3584_v27 }
0x1b34   :  { %5073 = vmatprep.subr.mxu1 %v5366_v17 }
0x1b35   :  { %v5316_v30 = vpop.eup %5315 }
0x1b36   :  { %v3504_v32 = vmul.f32 %v5316_v30, %v5312_v12 }
0x1b38   :  { %5061 = vmatmul.mubr.msk.f32.vlgmr.msra.gmra.mrb[26].mxu0 %vm106_vm0, %v3504_v32  ;;  %v4671_v32 = vld [vmem:[%s6125_s14 + $0x30] sm:$0xff] }
0x1b39   :  { %v5318_v33 = vpop.eup %5317  ;;  %5069 = vmatpush3.msra.mxu0 %v4629_v20 }
0x1b3a   :  { %v3506_v35 = vmul.f32 %v5318_v33, %v5314_v14  ;;  %5078 = vmatprep.subr.mxu0 %v5366_v17  ;;  %v4672_v33 = vld [vmem:[%s6125_s14 + $0x38] sm:$0xff] }
0x1b3c   :  { %5066 = vmatmul.mubr.msk.f32.vlgmr.msra.gmra.mrb[42].mxu1 %vm106_vm0, %v3506_v35 }
0x1b3d   :  { %5074 = vmatpush3.xpose.msk.msra.mxu1 %vm106_vm0, %v3745_v29  ;;  %5075 = vmatprep.mubr.msk.f32.mxu1 %vm5367_vm1, %v5366_v17  ;;  %v4670_v29 = vld [vmem:[%s6125_s14 + $0x28] sm:$0xff] }
0x1b3e   :  { %5083 = vmatprep.subr.mxu1 %v5366_v17 }
0x1b40   :  { %5076 = vmatmul.mubr.msk.f32.vlgmr.msra.gmra.mrb[44].mxu1 %vm106_vm0, %v3743_v36 }
0x1b41   :  { %5085 = vmatprep.mubr.msk.f32.mxu1 %vm5367_vm1, %v5366_v17 }
0x1c0b   :  { %v3579_v37 = vpop.f32.mrb[26].mxu0 }
0x1c0c   :  { %v5062_v38 = vpop.f32.mrb[27].mxu0  ;;  %5070 = vmatprep.mubr.msk.f32.mxu0 %vm106_vm0, %v3579_v37 }
0x1c0f   :  { %v3655_v6 = vpop.f32.mrb[42].mxu1 }
0x1c10   :  { %v5067_v11 = vpop.f32.mrb[43].mxu1  ;;  %5071 = vmatmul.mubr.msk.f32.vlgmr.msra.gmra.mrb[20].mxu0 %vm106_vm0, %v3655_v6 }
0x1c11   :  { %5079 = vmatpush3.xpose.msk.msra.mxu0 %vm106_vm0, %v3823_v34  ;;  %5080 = vmatprep.mubr.msk.f32.mxu0 %vm5367_vm1, %v5366_v17  ;;  %v5183_v34 = vpack.c.bf16 %v4672_v33, %v4671_v32 }
0x1c12   :  { %5088 = vmatprep.subr.mxu0 %v5366_v17 }
0x1c13   :  { %v3816_v40 = vpop.f32.mrb[44].mxu1 }
0x1c14   :  { %v3817_v41 = vadd.f32 %v3816_v40, %v5602_v28  ;;  %v5077_v24 = vpop.f32.mrb[45].mxu1  ;;  %5081 = vmatmul.mubr.msk.f32.vlgmr.msra.gmra.mrb[28].mxu0 %vm106_vm0, %v3821_v39  ;;  %v4667_v40 = vld [vmem:[%s6123_s12 + $0x1] ss:$0 sm:$0xff] }
0x1c15   :  { %5090 = vmatprep.mubr.msk.f32.mxu0 %vm5367_vm1, %v5366_v17 }
0x1c16   :  { %v3898_v42 = vsel %vm106_vm0, %v3817_v41, -inf }
0x1c17   :  { %3899 = vmax.xlane.f32.xlu1 %v3898_v42 }
0x1ca4   :  { %v3900_v45 = vpop.xlane.xlu1 %3899 }
0x1ca5   :  { %v3904_v46 = vsub.f32 %v3817_v41, %v3900_v45  ;;  %v4668_v45 = vld [vmem:[%s6124_s13 + $0x1] ss:$0 sm:$0xff] }
0x1ca7   :  { %v3906_v48 = vmul.f32 1.442695, %v3904_v46 }
0x1ca9   :  { %5319 = vpow2.f32 %v3906_v48 }
0x1cb3   :  { %v5320_v28 = vpop.eup %5319 }
0x1cb4   :  { %v3910_v53 = vsel %vm106_vm0, %v5320_v28, 0.0 }
0x1ce7   :  { %v3894_v49 = vpop.f32.mrb[28].mxu0 }
0x1ce8   :  { %v3895_v50 = vadd.f32 %v3894_v49, %v5605_v31  ;;  %v5082_v51 = vpop.f32.mrb[29].mxu0 }
0x1ce9   :  { %v4677_v51 = vld [vmem:[%s6127_s16 + $0x40] sm:$0xff] }
0x1cea   :  { %v3901_v52 = vsel %vm106_vm0, %v3895_v50, -inf }
0x1ceb   :  { %3902 = vmax.xlane.f32.xlu0 %v3901_v52  ;;  %v4678_v52 = vld [vmem:[%s6127_s16 + $0x48] sm:$0xff] }
0x1cef   :  { %3911 = vadd.xlane.f32.xlu0 %v3910_v53  ;;  %v4679_v53 = vld [vmem:[%s6127_s16 + $0x50] sm:$0xff] }
0x1d05   :  { %3920 = vrot.lane.b32.xlu0 %v5852_v22, %s6161_s23 }
0x1d78   :  { %v3903_v54 = vpop.xlane.xlu0 %3902 }
0x1d79   :  { %v3905_v55 = vsub.f32 %v3895_v50, %v3903_v54  ;;  %v4680_v54 = vld [vmem:[%s6127_s16 + $0x58] sm:$0xff] }
0x1d7b   :  { %v3908_v56 = vmul.f32 1.442695, %v3905_v55  ;;  %v4681_v55 = vld [vmem:[%s6127_s16 + $0x60] sm:$0xff] }
0x1d7c   :  { %v3912_v57 = vpop.xlane.xlu0 %3911 }
0x1d7d   :  { %5321 = vpow2.f32 %v3908_v56  ;;  %v4682_v56 = vld [vmem:[%s6127_s16 + $0x68] sm:$0xff] }
0x1d7e   :  { %5323 = vrcp.f32 %v3912_v57  ;;  %v5195_v57 = vpack.c.bf16 %v4682_v56, %v4681_v55 }
0x1d80   :  { %v3921_v58 = vpop.permute.xlu0 %3920 }
0x1d81   :  { %5084 = vmatpush3.msra.mxu1 %v3921_v58  ;;  %v4683_v58 = vld [vmem:[%s6127_s16 + $0x70] sm:$0xff] }
0x1d87   :  { %v5322_v31 = vpop.eup %5321 }
0x1d88   :  { %v5324_v59 = vpop.eup %5323  ;;  %v3913_v60 = vsel %vm106_vm0, %v5322_v31, 0.0 }
0x1d89   :  { %v3917_v61 = vmul.f32 %v5324_v59, %v5320_v28  ;;  %3914 = vadd.xlane.f32.xlu1 %v3913_v60  ;;  %v5187_v28 = vpack.c.bf16 %v4678_v52, %v4677_v51  ;;  %v4674_v60 = vld [vmem:[%s6126_s15 + $0x1] ss:$0 sm:$0xff] }
0x1d8b   :  { %5086 = vmatmul.mubr.msk.f32.vlgmr.msra.gmra.mrb[46].mxu1 %vm106_vm0, %v3917_v61 }
0x1d9a   :  { %3996 = vrot.lane.b32.xlu1 %v5850_v47, %s6161_s23 }
0x1e16   :  { %v3915_v22 = vpop.xlane.xlu1 %3914 }
0x1e17   :  { %5325 = vrcp.f32 %v3915_v22 }
0x1e1a   :  { %v3997_v63 = vpop.permute.xlu1 %3996 }
0x1e1b   :  { %5089 = vmatpush3.msra.mxu0 %v3997_v63 }
0x1e1c   :  { %5093 = vmatprep.subr.mxu0 %v4630_v62 }
0x1e21   :  { %v5326_v0 = vpop.eup %5325 }
0x1e22   :  { %v3919_v1 = vmul.f32 %v5326_v0, %v5322_v31  ;;  %v4684_v31 = vld [vmem:[%s6127_s16 + $0x78] sm:$0xff] }
0x1e23   :  { %v5199_v59 = vpack.c.bf16 %v4684_v31, %v4683_v58 }
0x1e24   :  { %5091 = vmatmul.mubr.msk.f32.vlgmr.msra.gmra.mrb[30].mxu0 %vm106_vm0, %v3919_v1 }
0x1e25   :  { %5094 = vmatpush3.msra.mxu0 %v4630_v62 }
0x1e26   :  { %5188 = vmatprep.subr.bf16.mxu0 %v5187_v28 }
0x1e5e   :  { %v3992_v2 = vpop.f32.mrb[46].mxu1 }
0x1e5f   :  { %v5087_v19 = vpop.f32.mrb[47].mxu1  ;;  %5095 = vmatprep.mubr.msk.f32.mxu0 %vm106_vm0, %v3992_v2 }
0x1ef7   :  { %v4068_v16 = vpop.f32.mrb[30].mxu0 }
0x1ef8   :  { %v5092_v47 = vpop.f32.mrb[31].mxu0  ;;  %5096 = vmatmul.mubr.msk.f32.vlgmr.msra.gmra.mrb[20].mxu0 %vm106_vm0, %v4068_v16 }
0x1ef9   :  { %5190 = vmatpush3.bf16.msra.mxu0 %v5187_v28 }
0x1fcb   :  { %v5097_v4 = vpop.f32.mrb[20].mxu0 }
0x1fcc   :  { %v5211_v5 = vadd.f32 %v5097_v4, %v4640_v3  ;;  %v4144_v7 = vpop.f32.mrb[21].mxu0 }
0x1fcd   :  { %v5212_v8 = vadd.f32 %v4640_v3, %v4144_v7 }
0x1fce   :  { %v4156_v9 = vadd.f32 %v5211_v5, %v5839_v44 }
0x1fcf   :  { %v4155_v10 = vadd.f32 %v5212_v8, %v5837_v43  ;;  %v4669_v43 = vld [vmem:[%s6125_s14 + $0x20] sm:$0xff] }
0x1fd0   :  { %v4164_v12 = vsel %vm298_vm2, %v4156_v9, 0.0  ;;  %v5179_v30 = vpack.c.bf16 %v4670_v29, %v4669_v43 }
0x1fd1   :  { %4165 = vadd.xlane.f32.xlu0 %v4164_v12  ;;  %v4161_v13 = vsel %vm298_vm2, %v4155_v10, 0.0 }
0x1fd2   :  { %4162 = vadd.xlane.f32.xlu1 %v4161_v13  ;;  %5180 = vmatprep.subr.bf16.mxu1 %v5179_v30 }
0x1fd3   :  { %5182 = vmatpush3.bf16.msra.mxu1 %v5179_v30 }
0x1fd4   :  { %5184 = vmatprep.subr.bf16.mxu1 %v5183_v34 }
0x1fd7   :  { %5186 = vmatpush3.bf16.msra.mxu1 %v5183_v34 }
0x205e   :  { %v4166_v14 = vpop.xlane.xlu0 %4165 }
0x205f   :  { %v4168_v15 = vmul.f32 0.03125, %v4166_v14  ;;  %v4163_v18 = vpop.xlane.xlu1 %4162 }
0x2060   :  { %v4167_v20 = vmul.f32 0.03125, %v4163_v18 }
0x2061   :  { %v4170_v21 = vsub.f32 %v4156_v9, %v4168_v15 }
0x2062   :  { %v4169_v23 = vsub.f32 %v4155_v10, %v4167_v20  ;;  %v4686_v20 = vld [vmem:[%s6128_s17 + $0x1] ss:$0 sm:$0xff] }
0x2063   :  { %v4172_v25 = vmul.f32 %v4170_v21, %v4170_v21 }
0x2064   :  { %v4171_v26 = vmul.f32 %v4169_v23, %v4169_v23 }
0x2065   :  { %v4176_v27 = vsel %vm298_vm2, %v4172_v25, 0.0 }
0x2066   :  { %4177 = vadd.xlane.f32.xlu1 %v4176_v27  ;;  %v4173_v44 = vsel %vm298_vm2, %v4171_v26, 0.0 }
0x2067   :  { %4174 = vadd.xlane.f32.xlu0 %v4173_v44 }
0x20f3   :  { %v4178_v35 = vpop.xlane.xlu1 %4177 }
0x20f4   :  { %v4180_v36 = vmul.f32 0.03125, %v4178_v35  ;;  %v4175_v37 = vpop.xlane.xlu0 %4174 }
0x20f5   :  { %v4179_v38 = vmul.f32 0.03125, %v4175_v37 }
0x20f6   :  { %v4182_v6 = vadd.f32 1e-05, %v4180_v36 }
0x20f7   :  { %v4181_v11 = vadd.f32 1e-05, %v4179_v38 }
0x20f8   :  { %5327 = vrsqrt.f32 %v4182_v6 }
0x20f9   :  { %5329 = vrsqrt.f32 %v4181_v11 }
0x2102   :  { %v5328_v39 = vpop.eup %5327 }
0x2103   :  { %v5330_v41 = vpop.eup %5329  ;;  %v4186_v24 = vmul.f32 %v5328_v39, %v4170_v21  ;;  %v4461_v39 = vld [vmem:[%s6131_s20] sm:$0xff] }
0x2104   :  { %v4185_v42 = vmul.f32 %v5330_v41, %v4169_v23 }
0x2105   :  { %v4194_v46 = vmul.f32 %v4667_v40, %v4186_v24  ;;  %v4463_v24 = vld [vmem:[%s6131_s20 + $0x10] sm:$0xff] }
0x2106   :  { %v4193_v48 = vmul.f32 %v4667_v40, %v4185_v42  ;;  %v4462_v40 = vld [vmem:[%s6131_s20 + $0x8] sm:$0xff]  ;;  %v4464_v42 = vld [vmem:[%s6131_s20 + $0x18] sm:$0xff] }
0x2107   :  { %v4202_v50 = vadd.f32 %v4668_v45, %v4194_v46  ;;  %v5204_v41 = vpack.c.bf16 %v4462_v40, %v4461_v39  ;;  %v5207_v46 = vpack.c.bf16 %v4464_v42, %v4463_v24 }
0x2108   :  { %v4201_v49 = vadd.f32 %v4668_v45, %v4193_v48  ;;  %v5379_v45 = vmov 0.0|0.0  }
0x2109   :  { %5203 = vmatprep.subr.bf16.mxu1 %v5379_v45 }
0x210a   :  { %5106 = vmatprep.mubr.msk.f32.mxu1 %vm298_vm2, %v4201_v49 }
0x210b   :  { %5107 = vmatmul.mubr.msk.f32.vlgmr.msra.gmra.mrb[48].mxu1 %vm298_vm2, %v4202_v50 }
0x210c   :  { %5136 = vmatprep.mubr.msk.f32.mxu1 %vm5367_vm1, %v5366_v17  ;;  %v5191_v17 = vpack.c.bf16 %v4680_v54, %v4679_v53  ;;  %5205 = vmatpush3.bf16.msra.mxu1 %v5204_v41  ;;  %v4691_v54 = vld [vmem:[%s6129_s18 + $0x1] ss:$0 sm:$0xff]  ;;  %s5380_s18 = smov [#allocation2]  }
0x210d   :  { %5206 = vmatprep.subr.bf16.mxu1 %v5379_v45  ;;  %s4558_s24 = sshll.u32 %s5380_s18, 4  ;;  %s4559_s24 = int_to_ptr.vmem [resolvable:$true] %s4558_s24 }
0x210e   :  { %5192 = vmatprep.subr.bf16.mxu0 %v5191_v17  ;;  %p5346_p1 = scmp.lt.s32.totalorder %s4559_s24, %s4559_s24 }
0x210f   :  { %5194 = vmatpush3.bf16.msra.mxu0 %v5191_v17 }
0x2110   :  { %5196 = vmatprep.subr.bf16.mxu0 %v5195_v57  ;;  %5208 = vmatpush3.bf16.msra.mxu1 %v5207_v46 }
0x2113   :  { %5198 = vmatpush3.bf16.msra.mxu0 %v5195_v57  ;;  %v4692_v57 = vld [vmem:[%s6130_s19 + $0x1] ss:$0 sm:$0xff]  ;;  %s5341_s19 = scalar_lea.vmem %s4559_s24, 32 }
0x2114   :  { %5200 = vmatprep.subr.bf16.mxu0 %v5199_v59  ;;  %p5342_p0 = scmp.ne.s32.totalorder %s4559_s24, %s5341_s19  ;;  %p5347_p2 = scmp.lt.s32.totalorder %s5341_s19, %s5341_s19 }
0x2116   :  { %p5348_p3 = por %p5347_p2, %p5346_p1 }
0x2117   :  { %5202 = vmatpush3.bf16.msra.mxu0 %v5199_v59 }
0x2118   :  { %p5349_p4 = pnand %p5348_p3, %p5342_p0 }
0x21de   :  { %v5108_v61 = vpop.f32.mrb[48].mxu1 }
0x21df   :  { %v4294_v22 = vadd.f32 %v5108_v61, %v4674_v60  ;;  %v4288_v62 = vpop.f32.mrb[49].mxu1 }
0x21e0   :  { %v4289_v63 = vadd.f32 %v4674_v60, %v4288_v62  ;;  %v4693_v62 = vld [vmem:[%s6132_s21] ss:$0 sm:$0xff] }
0x21e1   :  { %v4298_v0 = vmul.f32 %v4294_v22, %v4294_v22 }
0x21e2   :  { %v4297_v1 = vmul.f32 %v4289_v63, %v4289_v63 }
0x21e3   :  { %v4300_v2 = vmul.f32 %v4298_v0, %v4294_v22 }
0x21e4   :  { %v4299_v19 = vmul.f32 %v4297_v1, %v4289_v63 }
0x21e5   :  { %v4302_v16 = vmul.f32 0.044715, %v4300_v2 }
0x21e6   :  { %v4301_v47 = vmul.f32 0.044715, %v4299_v19 }
0x21e7   :  { %v4304_v3 = vadd.f32 %v4302_v16, %v4294_v22 }
0x21e8   :  { %v4303_v4 = vadd.f32 %v4301_v47, %v4289_v63 }
0x21e9   :  { %v4306_v5 = vmul.f32 0.7978846, %v4304_v3 }
0x21ea   :  { %v4305_v7 = vmul.f32 0.7978846, %v4303_v4 }
0x21eb   :  { %5331 = vtanh.f32 %v4306_v5 }
0x21ec   :  { %5333 = vtanh.f32 %v4305_v7 }
0x21f5   :  { %v5332_v8 = vpop.eup %5331 }
0x21f6   :  { %v5334_v9 = vpop.eup %5333  ;;  %v4310_v10 = vadd.f32 1.0, %v5332_v8 }
0x21f7   :  { %v4309_v12 = vadd.f32 1.0, %v5334_v9 }
0x21f8   :  { %v4312_v13 = vmul.f32 0.5, %v4310_v10 }
0x21f9   :  { %v4311_v14 = vmul.f32 0.5, %v4309_v12 }
0x21fa   :  { %v4314_v18 = vmul.f32 %v4312_v13, %v4294_v22 }
0x21fb   :  { %v4313_v15 = vmul.f32 %v4311_v14, %v4289_v63 }
0x21fd   :  { %5125 = vmatprep.mubr.msk.f32.mxu0 %vm2270_vm3, %v4313_v15 }
0x21fe   :  { %5126 = vmatmul.mubr.msk.f32.vlgmr.msra.gmra.mrb[32].mxu0 %vm2270_vm3, %v4314_v18 }
0x22d1   :  { %v5127_v21 = vpop.f32.mrb[32].mxu0 }
0x22d2   :  { %v4410_v23 = vadd.f32 %v5127_v21, %v4686_v20  ;;  %v4404_v25 = vpop.f32.mrb[33].mxu0 }
0x22d3   :  { %v4405_v26 = vadd.f32 %v4686_v20, %v4404_v25 }
0x22d4   :  { %v4414_v27 = vadd.f32 %v4410_v23, %v4202_v50 }
0x22d5   :  { %v4413_v44 = vadd.f32 %v4405_v26, %v4201_v49 }
0x22d6   :  { %v4422_v43 = vsel %vm298_vm2, %v4414_v27, 0.0 }
0x22d7   :  { %4423 = vadd.xlane.f32.xlu0 %v4422_v43  ;;  %v4419_v29 = vsel %vm298_vm2, %v4413_v44, 0.0 }
0x22d8   :  { %4420 = vadd.xlane.f32.xlu1 %v4419_v29 }
0x2364   :  { %v4424_v30 = vpop.xlane.xlu0 %4423 }
0x2365   :  { %v4426_v32 = vmul.f32 0.03125, %v4424_v30  ;;  %v4421_v33 = vpop.xlane.xlu1 %4420 }
0x2366   :  { %v4425_v34 = vmul.f32 0.03125, %v4421_v33 }
0x2367   :  { %v4428_v35 = vsub.f32 %v4414_v27, %v4426_v32 }
0x2368   :  { %v4427_v36 = vsub.f32 %v4413_v44, %v4425_v34 }
0x2369   :  { %v4430_v37 = vmul.f32 %v4428_v35, %v4428_v35 }
0x236a   :  { %v4429_v38 = vmul.f32 %v4427_v36, %v4427_v36 }
0x236b   :  { %v4434_v6 = vsel %vm298_vm2, %v4430_v37, 0.0 }
0x236c   :  { %4435 = vadd.xlane.f32.xlu0 %v4434_v6  ;;  %v4431_v11 = vsel %vm298_vm2, %v4429_v38, 0.0 }
0x236d   :  { %4432 = vadd.xlane.f32.xlu1 %v4431_v11 }
0x23f9   :  { %v4436_v48 = vpop.xlane.xlu0 %4435 }
0x23fa   :  { %v4438_v49 = vmul.f32 0.03125, %v4436_v48  ;;  %v4433_v50 = vpop.xlane.xlu1 %4432 }
0x23fb   :  { %v4437_v51 = vmul.f32 0.03125, %v4433_v50 }
0x23fc   :  { %v4440_v52 = vadd.f32 1e-05, %v4438_v49 }
0x23fd   :  { %v4439_v28 = vadd.f32 1e-05, %v4437_v51 }
0x23fe   :  { %5335 = vrsqrt.f32 %v4440_v52 }
0x23ff   :  { %5337 = vrsqrt.f32 %v4439_v28 }
0x2408   :  { %v5336_v53 = vpop.eup %5335 }
0x2409   :  { %v5338_v17 = vpop.eup %5337  ;;  %v4444_v55 = vmul.f32 %v5336_v53, %v4428_v35 }
0x240a   :  { %v4443_v56 = vmul.f32 %v5338_v17, %v4427_v36 }
0x240b   :  { %v4452_v58 = vmul.f32 %v4691_v54, %v4444_v55 }
0x240c   :  { %v4451_v31 = vmul.f32 %v4691_v54, %v4443_v56 }
0x240d   :  { %v4460_v59 = vadd.f32 %v4692_v57, %v4452_v58 }
0x240e   :  { %v4459_v60 = vadd.f32 %v4692_v57, %v4451_v31 }
0x240f   :  { %v4474_v61 = vrot.slane %v4460_v59, 7 }
0x2411   :  { %v4476_v22 = vsel %vm4475_vm4, %v4474_v61, %v4459_v60 }
0x2412   :  { %5137 = vmatmul.mubr.msk.f32.vlgmr.msra.gmra.mrb[50].mxu1 %vm298_vm2, %v4476_v22 }
0x24e5   :  { %v4545_v63 = vpop.f32.mrb[50].mxu1 }
0x24e6   :  { %v4546_v0 = vadd.f32 %v4693_v62, %v4545_v63  ;;  %v5138_v1 = vpop.f32.mrb[51].mxu1 }
0x24e8   :  { %5339 = vtanh.f32 %v4546_v0 }
0x24f2   :  { %v5340_v2 = vpop.eup %5339 }
0x24f3   :  { %4551 = vst.msk [vmem:[#allocation2] sm:$0x3] %vm4550_vm5, %v5340_v2 }
0x24f4   :  { %5352 = shalt.err (!%p5349_p4)
}
0x24f5   :  { %s5353_s21 = scalar_lea.hbm %s6133_s22, 32 }
0x24f6   :  { %p5354_p5 = scmp.ne.s32.totalorder %s6133_s22, %s5353_s21  ;;  %p5357_p6 = scmp.lt.u32.totalorder %s5353_s21, %s6133_s22 }
0x24f8   :  { %p5359_p7 = pnand %p5357_p6, %p5354_p5 }
0x24fa   :  { %5362 = shalt.err (!%p5359_p7)
}
0x24fb   :  { %4561 = dma.vmem_to_hbm [thread:$0]  %s4559_s24, 32, %s6133_s22, [#allocation3]  }
0x24fc   :  { %5363 = dma.done.wait [#allocation3], 32  }
0x24fd   :  { %5364 = vsyncadd [#allocation3], 4294967264 }
0x24fe   :  { %4565 = vsyncpa [#allocation3], 1 }

</bundles_post_ra>
